<compile_context>
chip_gen: v6e
topology: v6e:2x2x1
jax: 0.10.0
libtpu: 0.0.40
codegen_flags: <defaults>
</compile_context>

<pallas_src>
import functools

import jax
import jax.numpy as jnp
from jax.experimental import pallas as pl
from jax.experimental.pallas import tpu as pltpu

IN_FEATURES = 20
LAYERS = (200, 200, 200)
SLOPE = 0.1
HPAD = 256            # hidden width padded to a multiple of the 128-lane vreg
MAX_TILE_B = 2048     # batch lanes per grid step (activations ~1-2 MB << 32 MiB VMEM)


def _round_up(x, m):
    return ((x + m - 1) // m) * m


def _cdiv(a, b):
    return -(-a // b)


def _elementwise_dtype():
    """bf16 elementwise on v6e/v7x (bf16-capable VPU); f32 on v5e and older."""
    try:
        kind = jax.devices()[0].device_kind.lower()
    except Exception:
        return jnp.float32
    return jnp.bfloat16 if ("v6" in kind or "v7" in kind) else jnp.float32


def mlp_kernel(x_ref,
               w0_ref, b0_ref,
               w1_ref, b1_ref,
               w2_ref, b2_ref,
               wo_ref, bo_ref,
               o_ref,
               *, slope, elem_dtype):
    # Transposed layout: activations are (features, batch); batch sits on lanes.
    slope = jnp.asarray(slope, elem_dtype)

    def leaky(h):
        return jnp.maximum(h, slope * h)   # valid since 0 < slope < 1

    x = x_ref[...].astype(jnp.bfloat16)                                  # (20, tile_b)

    # Hidden layers on the MXU; bias add + leaky-ReLU in elem_dtype (bf16 on v6e/v7x).
    h = jnp.dot(w0_ref[...], x, preferred_element_type=elem_dtype) + b0_ref[...]
    h = leaky(h)
    h = jnp.dot(w1_ref[...], h.astype(jnp.bfloat16),
                preferred_element_type=elem_dtype) + b1_ref[...]
    h = leaky(h)
    h = jnp.dot(w2_ref[...], h.astype(jnp.bfloat16),
                preferred_element_type=elem_dtype) + b2_ref[...]
    h = leaky(h)

    # Output layer (out_features == 1): (1, HPAD) @ (HPAD, tile_b) on the MXU,
    # f32 accumulation, lane-dense (1, tile_b) result -> unmasked dense stores.
    y = jnp.dot(wo_ref[...], h.astype(jnp.bfloat16),
                preferred_element_type=jnp.float32) + bo_ref[...]
    o_ref[...] = jax.nn.sigmoid(y)[None]                                 # (1, 1, tile_b)


def init_params(key, layers=LAYERS, in_features=IN_FEATURES):
    """Deterministic synthetic parameters (same shapes/init scale as nn.Linear)."""
    dims = [in_features] + list(layers) + [1]
    params = []
    for i in range(len(dims) - 1):
        key, kw, kb = jax.random.split(key, 3)
        bound = 1.0 / jnp.sqrt(dims[i])
        w = jax.random.uniform(kw, (dims[i], dims[i + 1]), jnp.float32, -bound, bound)
        b = jax.random.uniform(kb, (dims[i + 1],), jnp.float32, -bound, bound)
        params.append((w, b))
    return params


def prepare_params(params, elem_dtype):
    """Transpose to (out, in), zero-pad hidden width 200->HPAD, cast for MXU/VPU."""
    (w0, b0), (w1, b1), (w2, b2), (wo, bo) = params

    def pad_to(a, shape):
        return jnp.pad(a, [(0, t - s) for s, t in zip(a.shape, shape)])

    w0t = pad_to(w0.T, (HPAD, IN_FEATURES)).astype(jnp.bfloat16)   # (256, 20)
    w1t = pad_to(w1.T, (HPAD, HPAD)).astype(jnp.bfloat16)          # (256, 256)
    w2t = pad_to(w2.T, (HPAD, HPAD)).astype(jnp.bfloat16)
    b0t = pad_to(b0.reshape(-1, 1), (HPAD, 1)).astype(elem_dtype)  # (256, 1)
    b1t = pad_to(b1.reshape(-1, 1), (HPAD, 1)).astype(elem_dtype)
    b2t = pad_to(b2.reshape(-1, 1), (HPAD, 1)).astype(elem_dtype)
    wot = pad_to(wo.T, (1, HPAD)).astype(jnp.bfloat16)             # (1, 256)
    bot = bo.reshape(1, 1).astype(jnp.float32)                     # (1, 1)
    return (w0t, b0t, w1t, b1t, w2t, b2t, wot, bot)


def net_forward(x, prepared, slope=SLOPE, elem_dtype=None, tile_b=None):
    """x: (B, 20) f32 -> (B, 1) f32, matching Net(layers=(200,200,200), slope=0.1)."""
    if elem_dtype is None:
        elem_dtype = _elementwise_dtype()
    (w0, b0, w1, b1, w2, b2, wo, bo) = prepared
    B = x.shape[0]
    if tile_b is None:
        # Aim for >=4 grid steps at large B (keeps v7x's 2 TCs busy via "parallel"),
        # floor 128 lanes, cap at MAX_TILE_B (well inside the 32 MiB scoped VMEM).
        tile_b = max(128, min(MAX_TILE_B, _round_up(_cdiv(B, 4), 128)))
    tile_b = _round_up(tile_b, 128)
    num_tiles = _cdiv(B, tile_b)
    Bp = num_tiles * tile_b

    # Lay the batch across lanes: (B, 20) -> (20, Bp), zero-padded (padding is
    # exact: padded columns produce bounded sigmoid values that get sliced off).
    xt = jnp.pad(x.T, ((0, 0), (0, Bp - B)))

    resident = lambda i: (0, 0)   # constant block index -> stays VMEM-resident
    in_specs = [
        pl.BlockSpec((IN_FEATURES, tile_b), lambda i: (0, i)),   # x tile (streamed)
        pl.BlockSpec((HPAD, IN_FEATURES), resident),             # w0^T (bf16)
        pl.BlockSpec((HPAD, 1), resident),                       # b0
        pl.BlockSpec((HPAD, HPAD), resident),                    # w1^T (bf16)
        pl.BlockSpec((HPAD, 1), resident),                       # b1
        pl.BlockSpec((HPAD, HPAD), resident),                    # w2^T (bf16)
        pl.BlockSpec((HPAD, 1), resident),                       # b2
        pl.BlockSpec((1, HPAD), resident),                       # wo row (bf16)
        pl.BlockSpec((1, 1), resident),                          # bo
    ]
    out_specs = pl.BlockSpec((1, 1, tile_b), lambda i: (i, 0, 0))

    flops = 2 * Bp * (IN_FEATURES * HPAD + 2 * HPAD * HPAD + HPAD)
    param_bytes = sum(int(a.size) * a.dtype.itemsize for a in prepared)
    bytes_accessed = int(xt.size) * xt.dtype.itemsize + param_bytes + Bp * 4
    cost = pl.CostEstimate(flops=flops, transcendentals=Bp,
                           bytes_accessed=int(bytes_accessed))

    kernel = functools.partial(mlp_kernel, slope=slope, elem_dtype=elem_dtype)
    y = pl.pallas_call(
        kernel,
        out_shape=jax.ShapeDtypeStruct((num_tiles, 1, tile_b), jnp.float32),
        grid=(num_tiles,),
        in_specs=in_specs,
        out_specs=out_specs,
        compiler_params=pltpu.CompilerParams(
            dimension_semantics=("parallel",),        # shard batch tiles across TCs (v7x)
            vmem_limit_bytes=32 * 1024 * 1024,
        ),
        cost_estimate=cost,
    )(xt, w0, b0, w1, b1, w2, b2, wo, bo)
    return y.reshape(Bp, 1)[:B]


def reference_forward(x, params, slope=SLOPE):
    """Pure-JAX f32 reference of the same forward pass."""
    (w0, b0), (w1, b1), (w2, b2), (wo, bo) = params
    h = x
    for w, b in ((w0, b0), (w1, b1), (w2, b2)):
        z = h @ w + b
        h = jnp.where(z > 0, z, slope * z)
    return jax.nn.sigmoid(h @ wo + bo)


if __name__ == "__main__":
    key = jax.random.PRNGKey(0)
    key, kx1, kx2 = jax.random.split(key, 3)

    params = init_params(key)
    elem_dtype = _elementwise_dtype()
    prepared = prepare_params(params, elem_dtype)

    # Small batch: single grid step (tile_b floors at 128 lanes; batch zero-padded).
    x1 = jax.random.normal(kx1, (8, IN_FEATURES), jnp.float32)
    out1 = jax.block_until_ready(net_forward(x1, prepared, elem_dtype=elem_dtype))
    ref1 = reference_forward(x1, params)
    assert out1.shape == (8, 1)
    # bf16 MXU operands (+ bf16 elementwise on v6e/v7x) -> loosened tolerance.
    assert jnp.allclose(out1, ref1, atol=2e-2, rtol=2e-2)

    # Multi-tile, ragged batch: exercises streamed x tiles + lane-dense output slab.
    x2 = jax.random.normal(kx2, (300, IN_FEATURES), jnp.float32)
    out2 = jax.block_until_ready(
        net_forward(x2, prepared, elem_dtype=elem_dtype, tile_b=128))
    ref2 = reference_forward(x2, params)
    assert out2.shape == (300, 1)
    assert jnp.allclose(out2, ref2, atol=2e-2, rtol=2e-2)

    print("KERNEL_OK")
</pallas_src>

<mosaic_0001>
module attributes {stable_mosaic.version = 11 : i64} {
  func.func @mlp_kernel(%arg0: i32, %arg1: memref<20x128xf32, #tpu.memory_space<vmem>>, %arg2: memref<256x20xbf16, #tpu.memory_space<vmem>>, %arg3: memref<256x1xf32, #tpu.memory_space<vmem>>, %arg4: memref<256x256xbf16, #tpu.memory_space<vmem>>, %arg5: memref<256x1xf32, #tpu.memory_space<vmem>>, %arg6: memref<256x256xbf16, #tpu.memory_space<vmem>>, %arg7: memref<256x1xf32, #tpu.memory_space<vmem>>, %arg8: memref<1x256xbf16, #tpu.memory_space<vmem>>, %arg9: memref<1x1xf32, #tpu.memory_space<vmem>>, %arg10: memref<1x1x128xf32, #tpu.memory_space<vmem>>) attributes {dimension_semantics = [#tpu.dimension_semantics<parallel>], iteration_bounds = array<i64: 1>, scalar_prefetch = 0 : i64, scratch_operands = 0 : i64, tpu.core_type = #tpu.core_type<tc>, window_params = [{transform_indices = @transform_0, window_bounds = array<i64: 20, 128>}, {pipeline_mode = #tpu.pipeline_mode<synchronous>, transform_indices = @transform_1, window_bounds = array<i64: 256, 20>}, {pipeline_mode = #tpu.pipeline_mode<synchronous>, transform_indices = @transform_2, window_bounds = array<i64: 256, 1>}, {pipeline_mode = #tpu.pipeline_mode<synchronous>, transform_indices = @transform_3, window_bounds = array<i64: 256, 256>}, {pipeline_mode = #tpu.pipeline_mode<synchronous>, transform_indices = @transform_4, window_bounds = array<i64: 256, 1>}, {pipeline_mode = #tpu.pipeline_mode<synchronous>, transform_indices = @transform_5, window_bounds = array<i64: 256, 256>}, {pipeline_mode = #tpu.pipeline_mode<synchronous>, transform_indices = @transform_6, window_bounds = array<i64: 256, 1>}, {pipeline_mode = #tpu.pipeline_mode<synchronous>, transform_indices = @transform_7, window_bounds = array<i64: 1, 256>}, {pipeline_mode = #tpu.pipeline_mode<synchronous>, transform_indices = @transform_8, window_bounds = array<i64: 1, 1>}, {transform_indices = @transform_9, window_bounds = array<i64: 1, 1, 128>}]} {
    %c0 = arith.constant 0 : index
    %c0_0 = arith.constant 0 : index
    %0 = vector.load %arg1[%c0, %c0_0] : memref<20x128xf32, #tpu.memory_space<vmem>>, vector<20x128xf32>
    %1 = arith.truncf %0 : vector<20x128xf32> to vector<20x128xbf16>
    %c0_1 = arith.constant 0 : index
    %c0_2 = arith.constant 0 : index
    %2 = vector.load %arg2[%c0_1, %c0_2] : memref<256x20xbf16, #tpu.memory_space<vmem>>, vector<256x20xbf16>
    %cst = arith.constant dense<0.000000e+00> : vector<256x128xf32>
    %3 = tpu.matmul %2, %1, %cst {dimension_numbers = #tpu.dot_dimension_numbers<[1], [0], [0], [1], [0, 0, 1, 1], [], []>} : vector<256x20xbf16>, vector<20x128xbf16>, vector<256x128xf32> -> vector<256x128xf32>
    %c0_3 = arith.constant 0 : index
    %c0_4 = arith.constant 0 : index
    %4 = vector.load %arg3[%c0_3, %c0_4] : memref<256x1xf32, #tpu.memory_space<vmem>>, vector<256x1xf32>
    %5 = vector.broadcast %4 : vector<256x1xf32> to vector<256x128xf32>
    %6 = arith.addf %3, %5 : vector<256x128xf32>
    %cst_5 = arith.constant 1.000000e-01 : f32
    %7 = vector.broadcast %cst_5 : f32 to vector<256x128xf32>
    %8 = arith.mulf %7, %6 : vector<256x128xf32>
    %9 = arith.maximumf %6, %8 : vector<256x128xf32>
    %c0_6 = arith.constant 0 : index
    %c0_7 = arith.constant 0 : index
    %10 = vector.load %arg4[%c0_6, %c0_7] : memref<256x256xbf16, #tpu.memory_space<vmem>>, vector<256x256xbf16>
    %11 = arith.truncf %9 : vector<256x128xf32> to vector<256x128xbf16>
    %cst_8 = arith.constant dense<0.000000e+00> : vector<256x128xf32>
    %12 = tpu.matmul %10, %11, %cst_8 {dimension_numbers = #tpu.dot_dimension_numbers<[1], [0], [0], [1], [0, 0, 1, 1], [], []>} : vector<256x256xbf16>, vector<256x128xbf16>, vector<256x128xf32> -> vector<256x128xf32>
    %c0_9 = arith.constant 0 : index
    %c0_10 = arith.constant 0 : index
    %13 = vector.load %arg5[%c0_9, %c0_10] : memref<256x1xf32, #tpu.memory_space<vmem>>, vector<256x1xf32>
    %14 = vector.broadcast %13 : vector<256x1xf32> to vector<256x128xf32>
    %15 = arith.addf %12, %14 : vector<256x128xf32>
    %cst_11 = arith.constant 1.000000e-01 : f32
    %16 = vector.broadcast %cst_11 : f32 to vector<256x128xf32>
    %17 = arith.mulf %16, %15 : vector<256x128xf32>
    %18 = arith.maximumf %15, %17 : vector<256x128xf32>
    %c0_12 = arith.constant 0 : index
    %c0_13 = arith.constant 0 : index
    %19 = vector.load %arg6[%c0_12, %c0_13] : memref<256x256xbf16, #tpu.memory_space<vmem>>, vector<256x256xbf16>
    %20 = arith.truncf %18 : vector<256x128xf32> to vector<256x128xbf16>
    %cst_14 = arith.constant dense<0.000000e+00> : vector<256x128xf32>
    %21 = tpu.matmul %19, %20, %cst_14 {dimension_numbers = #tpu.dot_dimension_numbers<[1], [0], [0], [1], [0, 0, 1, 1], [], []>} : vector<256x256xbf16>, vector<256x128xbf16>, vector<256x128xf32> -> vector<256x128xf32>
    %c0_15 = arith.constant 0 : index
    %c0_16 = arith.constant 0 : index
    %22 = vector.load %arg7[%c0_15, %c0_16] : memref<256x1xf32, #tpu.memory_space<vmem>>, vector<256x1xf32>
    %23 = vector.broadcast %22 : vector<256x1xf32> to vector<256x128xf32>
    %24 = arith.addf %21, %23 : vector<256x128xf32>
    %cst_17 = arith.constant 1.000000e-01 : f32
    %25 = vector.broadcast %cst_17 : f32 to vector<256x128xf32>
    %26 = arith.mulf %25, %24 : vector<256x128xf32>
    %27 = arith.maximumf %24, %26 : vector<256x128xf32>
    %c0_18 = arith.constant 0 : index
    %c0_19 = arith.constant 0 : index
    %28 = vector.load %arg8[%c0_18, %c0_19] : memref<1x256xbf16, #tpu.memory_space<vmem>>, vector<1x256xbf16>
    %29 = arith.truncf %27 : vector<256x128xf32> to vector<256x128xbf16>
    %cst_20 = arith.constant dense<0.000000e+00> : vector<1x128xf32>
    %30 = tpu.matmul %28, %29, %cst_20 {dimension_numbers = #tpu.dot_dimension_numbers<[1], [0], [0], [1], [0, 0, 1, 1], [], []>} : vector<1x256xbf16>, vector<256x128xbf16>, vector<1x128xf32> -> vector<1x128xf32>
    %c0_21 = arith.constant 0 : index
    %c0_22 = arith.constant 0 : index
    %31 = vector.load %arg9[%c0_21, %c0_22] : memref<1x1xf32, #tpu.memory_space<vmem>>, vector<1x1xf32>
    %32 = vector.broadcast %31 : vector<1x1xf32> to vector<1x128xf32>
    %33 = arith.addf %30, %32 : vector<1x128xf32>
    %34 = arith.negf %33 : vector<1x128xf32>
    %35 = math.exp %34 : vector<1x128xf32>
    %cst_23 = arith.constant 1.000000e+00 : f32
    %36 = vector.broadcast %cst_23 : f32 to vector<1x128xf32>
    %37 = arith.addf %36, %35 : vector<1x128xf32>
    %38 = arith.divf %36, %37 : vector<1x128xf32>
    %39 = vector.shape_cast %38 : vector<1x128xf32> to vector<1x1x128xf32>
    %c0_24 = arith.constant 0 : index
    %c0_25 = arith.constant 0 : index
    %c0_26 = arith.constant 0 : index
    %40 = vector.load %arg10[%c0_24, %c0_25, %c0_26] : memref<1x1x128xf32, #tpu.memory_space<vmem>>, vector<1x1x128xf32>
    tpu.vector_store %arg10[%c0_24, %c0_25, %c0_26], %39 {strides = array<i32>} : memref<1x1x128xf32, #tpu.memory_space<vmem>>, vector<1x1x128xf32>,
    return
  }
  func.func @transform_0(%arg0: i32) -> (i32, i32) {
    %c0_i32 = arith.constant 0 : i32
    %c0_i32_0 = arith.constant 0 : i32
    return %c0_i32, %arg0 : i32, i32
  }
  func.func @transform_1(%arg0: i32) -> (i32, i32) {
    %c0_i32 = arith.constant 0 : i32
    %c0_i32_0 = arith.constant 0 : i32
    %c0_i32_1 = arith.constant 0 : i32
    return %c0_i32, %c0_i32_0 : i32, i32
  }
  func.func @transform_2(%arg0: i32) -> (i32, i32) {
    %c0_i32 = arith.constant 0 : i32
    %c0_i32_0 = arith.constant 0 : i32
    %c0_i32_1 = arith.constant 0 : i32
    return %c0_i32, %c0_i32_0 : i32, i32
  }
  func.func @transform_3(%arg0: i32) -> (i32, i32) {
    %c0_i32 = arith.constant 0 : i32
    %c0_i32_0 = arith.constant 0 : i32
    %c0_i32_1 = arith.constant 0 : i32
    return %c0_i32, %c0_i32_0 : i32, i32
  }
  func.func @transform_4(%arg0: i32) -> (i32, i32) {
    %c0_i32 = arith.constant 0 : i32
    %c0_i32_0 = arith.constant 0 : i32
    %c0_i32_1 = arith.constant 0 : i32
    return %c0_i32, %c0_i32_0 : i32, i32
  }
  func.func @transform_5(%arg0: i32) -> (i32, i32) {
    %c0_i32 = arith.constant 0 : i32
    %c0_i32_0 = arith.constant 0 : i32
    %c0_i32_1 = arith.constant 0 : i32
    return %c0_i32, %c0_i32_0 : i32, i32
  }
  func.func @transform_6(%arg0: i32) -> (i32, i32) {
    %c0_i32 = arith.constant 0 : i32
    %c0_i32_0 = arith.constant 0 : i32
    %c0_i32_1 = arith.constant 0 : i32
    return %c0_i32, %c0_i32_0 : i32, i32
  }
  func.func @transform_7(%arg0: i32) -> (i32, i32) {
    %c0_i32 = arith.constant 0 : i32
    %c0_i32_0 = arith.constant 0 : i32
    %c0_i32_1 = arith.constant 0 : i32
    return %c0_i32, %c0_i32_0 : i32, i32
  }
  func.func @transform_8(%arg0: i32) -> (i32, i32) {
    %c0_i32 = arith.constant 0 : i32
    %c0_i32_0 = arith.constant 0 : i32
    %c0_i32_1 = arith.constant 0 : i32
    return %c0_i32, %c0_i32_0 : i32, i32
  }
  func.func @transform_9(%arg0: i32) -> (i32, i32, i32) {
    %c0_i32 = arith.constant 0 : i32
    %c0_i32_0 = arith.constant 0 : i32
    %c0_i32_1 = arith.constant 0 : i32
    return %arg0, %c0_i32, %c0_i32_0 : i32, i32, i32
  }
}

</mosaic_0001>

<bundles_post_ra>
// kernel: tpu_custom_call.1
= control target key start
LH: loop header
LB: loop body
LE: loop exit
PB: predicated region body
PF: predicated region fallthrough
CT: control target
= control target key end

     0   :  { %s3493_s0 = inlined_call_operand.vmem [shape: f32[20,128], index: 0, kind: input, shape index: {}]   ;;  %s3494_s1 = inlined_call_operand.vmem [shape: bf16[256,20], index: 1, kind: input, shape index: {}]   ;;  %s3495_s2 = inlined_call_operand.vmem [shape: f32[256,1], index: 2, kind: input, shape index: {}]   ;;  %s3496_s3 = inlined_call_operand.vmem [shape: bf16[256,256], index: 3, kind: input, shape index: {}]   ;;  %s3497_s4 = inlined_call_operand.vmem [shape: f32[256,1], index: 4, kind: input, shape index: {}]   ;;  %s3498_s5 = inlined_call_operand.vmem [shape: bf16[256,256], index: 5, kind: input, shape index: {}]   ;;  %s3499_s6 = inlined_call_operand.vmem [shape: f32[256,1], index: 6, kind: input, shape index: {}]   ;;  %s3500_s7 = inlined_call_operand.vmem [shape: bf16[1,256], index: 7, kind: input, shape index: {}]   ;;  %s3501_s8 = inlined_call_operand.<no memory space> [shape: f32[1,1], index: 8, kind: input, shape index: {}]   ;;  %s3502_s9 = inlined_call_operand.hbm [shape: f32[1,1,128], index: 9, kind: output, shape index: {}]  }
   0x1   :  { %v14_v0 = vstv %s3501_s8 }
   0x2   :  { %15 = vst [vmem:[#allocation2] sm:$0x1] %v14_v0 }
   0x3   :  { %v103_v1 = vld [vmem:[%s3495_s2 + $0xf0] sm:$0xff]  ;;  %vm394_vm0 = vcmask 1041408   ;;  %v2533_v4 = vmov 0   ;;  %v36_v6 = vld [vmem:[%s3493_s0] sm:$0xff]  ;;  %v104_v7 = vld [vmem:[%s3495_s2 + $0xf8] sm:$0xff]  ;;  %vm345_vm1 = vcmask 162816  }
   0x4   :  { %v87_v2 = vld [vmem:[%s3495_s2 + $0x70] sm:$0xff]  ;;  %2394 = vset.pattern.permute.xlu1 %v2533_v4  ;;  %2393 = vset.pattern.permute.xlu0 %v2533_v4  ;;  %v88_v8 = vld [vmem:[%s3495_s2 + $0x78] sm:$0xff]  ;;  %v37_v9 = vld [vmem:[%s3493_s0 + $0x8] sm:$0xff] }
   0x5   :  { %v38_v3 = vld [vmem:[%s3493_s0 + $0x10] sm:$0xf]  ;;  %257 = vperm.xlu0 %2393, %v103_v1   ;;  %177 = vperm.xlu1 %2394, %v87_v2   ;;  %v39_v11 = vpack.c.bf16 %v37_v9, %v36_v6  ;;  %v2395_v12 = vld [vmem:[%s3494_s1] sm:$0xff]   ;;  %v102_v15 = vld [vmem:[%s3495_s2 + $0xe8] sm:$0xff] }
   0x6   :  { %v40_v5 = vpack.c.bf16 %v38_v3, %v38_v3  ;;  %v2396_v13 = vld [vmem:[%s3494_s1 + $0x40] sm:$0xff]   ;;  %2352 = vmatprep.mubr.msk.bf16.mxu0 %vm345_vm1, %v2395_v12  ;;  %v2397_v16 = vld [vmem:[%s3494_s1 + $0x8] sm:$0xff]   ;;  %v2399_v19 = vld [vmem:[%s3494_s1 + $0x10] sm:$0xff]  }
   0x7   :  { %v101_v14 = vld [vmem:[%s3495_s2 + $0xe0] sm:$0xff]  ;;  %2368 = vmatprep.mubr.msk.bf16.mxu1 %vm345_vm1, %v2396_v13  ;;  %v2398_v17 = vld [vmem:[%s3494_s1 + $0x48] sm:$0xff]   ;;  %v2400_v20 = vld [vmem:[%s3494_s1 + $0x50] sm:$0xff]  }
   0x8   :  { %2388 = vmatprep.subr.msk.bf16.mxu0 %vm394_vm0, %v40_v5  ;;  %2389 = vmatprep.subr.msk.bf16.mxu1 %vm394_vm0, %v40_v5  ;;  %v396_v10 = vsel %vm394_vm0, %v40_v5, 0  ;;  %v86_v18 = vld [vmem:[%s3495_s2 + $0x68] sm:$0xff]  ;;  %v85_v21 = vld [vmem:[%s3495_s2 + $0x60] sm:$0xff]  ;;  %v100_v22 = vld [vmem:[%s3495_s2 + $0xd8] sm:$0xff] }
   0x9   :  { %2349 = vmatpush3.bf16.msra.mxu0 %v396_v10  ;;  %2386 = vmatpush3.bf16.msra.mxu1 %v396_v10  ;;  %v99_v23 = vld [vmem:[%s3495_s2 + $0xd0] sm:$0xff]  ;;  %v2401_v24 = vld [vmem:[%s3494_s1 + $0x18] sm:$0xff]   ;;  %v2403_v26 = vld [vmem:[%s3494_s1 + $0x20] sm:$0xff]  }
   0xa   :  { %2350 = vmatprep.subr.bf16.mxu0 %v39_v11  ;;  %2385 = vmatprep.subr.bf16.mxu1 %v39_v11  ;;  %v2402_v25 = vld [vmem:[%s3494_s1 + $0x58] sm:$0xff]   ;;  %v2404_v27 = vld [vmem:[%s3494_s1 + $0x60] sm:$0xff]   ;;  %v83_v29 = vld [vmem:[%s3495_s2 + $0x50] sm:$0xff] }
   0xb   :  { %262 = vperm.xlu0 %2393, %v104_v7   ;;  %182 = vperm.xlu1 %2394, %v88_v8   ;;  %v84_v28 = vld [vmem:[%s3495_s2 + $0x58] sm:$0xff]  ;;  %v98_v30 = vld [vmem:[%s3495_s2 + $0xc8] sm:$0xff]  ;;  %v97_v31 = vld [vmem:[%s3495_s2 + $0xc0] sm:$0xff] }
   0xc   :  { %v2405_v32 = vld [vmem:[%s3494_s1 + $0x28] sm:$0xff]   ;;  %v2407_v34 = vld [vmem:[%s3494_s1 + $0x30] sm:$0xff]   ;;  %v81_v37 = vld [vmem:[%s3495_s2 + $0x40] sm:$0xff] }
   0xd   :  { %2351 = vmatpush3.bf16.msra.mxu0 %v39_v11  ;;  %2387 = vmatpush3.bf16.msra.mxu1 %v39_v11  ;;  %v2406_v33 = vld [vmem:[%s3494_s1 + $0x68] sm:$0xff]   ;;  %v2408_v35 = vld [vmem:[%s3494_s1 + $0x70] sm:$0xff]   ;;  %v96_v38 = vld [vmem:[%s3495_s2 + $0xb8] sm:$0xff] }
   0xe   :  { %v82_v36 = vld [vmem:[%s3495_s2 + $0x48] sm:$0xff]  ;;  %v95_v39 = vld [vmem:[%s3495_s2 + $0xb0] sm:$0xff]  ;;  %v2409_v40 = vld [vmem:[%s3494_s1 + $0x38] sm:$0xff]  }
   0xf   :  { %247 = vperm.xlu0 %2393, %v101_v14   ;;  %252 = vperm.xlu1 %2394, %v102_v15   ;;  %v2410_v41 = vld [vmem:[%s3494_s1 + $0x78] sm:$0xff]   ;;  %v79_v43 = vld [vmem:[%s3495_s2 + $0x30] sm:$0xff]  ;;  %v94_v44 = vld [vmem:[%s3495_s2 + $0xa8] sm:$0xff] }
  0x10   :  { %2353 = vmatmul.mubr.msk.bf16.vlgmr.msra.gmra.mxu0 %vm345_vm1, %v2397_v16  ;;  %2369 = vmatmul.mubr.msk.bf16.vlgmr.msra.gmra.mxu1 %vm345_vm1, %v2398_v17  ;;  %v80_v42 = vld [vmem:[%s3495_s2 + $0x38] sm:$0xff]  ;;  %v93_v45 = vld [vmem:[%s3495_s2 + $0xa0] sm:$0xff]  ;;  %v78_v46 = vld [vmem:[%s3495_s2 + $0x28] sm:$0xff] }
  0x11   :  { %2356 = vmatprep.mubr.msk.bf16.mxu0 %vm345_vm1, %v2399_v19  ;;  %2372 = vmatprep.mubr.msk.bf16.mxu1 %vm345_vm1, %v2400_v20  ;;  %v77_v47 = vld [vmem:[%s3495_s2 + $0x20] sm:$0xff]  ;;  %v92_v48 = vld [vmem:[%s3495_s2 + $0x98] sm:$0xff]  ;;  %v91_v49 = vld [vmem:[%s3495_s2 + $0x90] sm:$0xff] }
  0x12   :  { %v76_v50 = vld [vmem:[%s3495_s2 + $0x18] sm:$0xff]  ;;  %v75_v51 = vld [vmem:[%s3495_s2 + $0x10] sm:$0xff]  ;;  %v90_v52 = vld [vmem:[%s3495_s2 + $0x88] sm:$0xff] }
  0x13   :  { %172 = vperm.xlu1 %2394, %v86_v18   ;;  %167 = vperm.xlu0 %2393, %v85_v21   ;;  %v89_v53 = vld [vmem:[%s3495_s2 + $0x80] sm:$0xff]  ;;  %v74_v54 = vld [vmem:[%s3495_s2 + $0x8] sm:$0xff]  ;;  %v702_v56 = vld [vmem:[%s3497_s4 + $0xf8] sm:$0xff] }
  0x14   :  { %v73_v55 = vld [vmem:[%s3495_s2] sm:$0xff]  ;;  %v701_v57 = vld [vmem:[%s3497_s4 + $0xf0] sm:$0xff]  ;;  %v686_v58 = vld [vmem:[%s3497_s4 + $0x78] sm:$0xff] }
  0x15   :  { %v685_v59 = vld [vmem:[%s3497_s4 + $0x70] sm:$0xff] }
  0x17   :  { %242 = vperm.xlu1 %2394, %v100_v22   ;;  %237 = vperm.xlu0 %2393, %v99_v23  }
  0x18   :  { %2357 = vmatmul.mubr.msk.bf16.gmra.mxu0 %vm345_vm1, %v2401_v24  ;;  %2373 = vmatmul.mubr.msk.bf16.gmra.mxu1 %vm345_vm1, %v2402_v25 }
  0x19   :  { %2360 = vmatprep.mubr.msk.bf16.mxu0 %vm345_vm1, %v2403_v26  ;;  %2376 = vmatprep.mubr.msk.bf16.mxu1 %vm345_vm1, %v2404_v27 }
  0x1b   :  { %162 = vperm.xlu1 %2394, %v84_v28   ;;  %157 = vperm.xlu0 %2393, %v83_v29  }
  0x1f   :  { %232 = vperm.xlu1 %2394, %v98_v30   ;;  %227 = vperm.xlu0 %2393, %v97_v31  }
  0x20   :  { %2361 = vmatmul.mubr.msk.bf16.gmra.mxu0 %vm345_vm1, %v2405_v32  ;;  %2377 = vmatmul.mubr.msk.bf16.gmra.mxu1 %vm345_vm1, %v2406_v33 }
  0x21   :  { %2364 = vmatprep.mubr.msk.bf16.mxu0 %vm345_vm1, %v2407_v34  ;;  %2380 = vmatprep.mubr.msk.bf16.mxu1 %vm345_vm1, %v2408_v35 }
  0x23   :  { %152 = vperm.xlu1 %2394, %v82_v36   ;;  %147 = vperm.xlu0 %2393, %v81_v37  }
  0x27   :  { %222 = vperm.xlu1 %2394, %v96_v38   ;;  %217 = vperm.xlu0 %2393, %v95_v39  }
  0x28   :  { %2365 = vmatmul.mubr.msk.bf16.gmra.mxu0 %vm345_vm1, %v2409_v40  ;;  %2381 = vmatmul.mubr.msk.bf16.gmra.mxu1 %vm345_vm1, %v2410_v41 }
  0x2b   :  { %142 = vperm.xlu1 %2394, %v80_v42   ;;  %137 = vperm.xlu0 %2393, %v79_v43  }
  0x2f   :  { %212 = vperm.xlu1 %2394, %v94_v44   ;;  %207 = vperm.xlu0 %2393, %v93_v45  }
  0x33   :  { %132 = vperm.xlu1 %2394, %v78_v46   ;;  %127 = vperm.xlu0 %2393, %v77_v47  }
  0x37   :  { %202 = vperm.xlu1 %2394, %v92_v48   ;;  %197 = vperm.xlu0 %2393, %v91_v49  }
  0x3b   :  { %122 = vperm.xlu1 %2394, %v76_v50   ;;  %117 = vperm.xlu0 %2393, %v75_v51  }
  0x3f   :  { %192 = vperm.xlu1 %2394, %v90_v52   ;;  %187 = vperm.xlu0 %2393, %v89_v53  }
  0x43   :  { %112 = vperm.xlu1 %2394, %v74_v54   ;;  %107 = vperm.xlu0 %2393, %v73_v55  }
  0x47   :  { %860 = vperm.xlu1 %2394, %v702_v56   ;;  %855 = vperm.xlu0 %2393, %v701_v57  }
  0x4b   :  { %780 = vperm.xlu1 %2394, %v686_v58   ;;  %775 = vperm.xlu0 %2393, %v685_v59  }
  0x4c   :  { %16 = vsyncpa [#allocation4], 0  ;;  %v700_v60 = vld [vmem:[%s3497_s4 + $0xe8] sm:$0xff]  ;;  %v699_v61 = vld [vmem:[%s3497_s4 + $0xe0] sm:$0xff] }
  0x4d   :  { %v684_v62 = vld [vmem:[%s3497_s4 + $0x68] sm:$0xff]  ;;  %v683_v63 = vld [vmem:[%s3497_s4 + $0x60] sm:$0xff]  ;;  %v698_v0 = vld [vmem:[%s3497_s4 + $0xd8] sm:$0xff] }
  0x4e   :  { %v697_v1 = vld [vmem:[%s3497_s4 + $0xd0] sm:$0xff]  ;;  %v682_v2 = vld [vmem:[%s3497_s4 + $0x58] sm:$0xff]  ;;  %v696_v4 = vld [vmem:[%s3497_s4 + $0xc8] sm:$0xff] }
  0x4f   :  { %850 = vperm.xlu1 %2394, %v700_v60   ;;  %845 = vperm.xlu0 %2393, %v699_v61   ;;  %v681_v3 = vld [vmem:[%s3497_s4 + $0x50] sm:$0xff]  ;;  %v695_v5 = vld [vmem:[%s3497_s4 + $0xc0] sm:$0xff]  ;;  %v680_v6 = vld [vmem:[%s3497_s4 + $0x48] sm:$0xff] }
  0x50   :  { %v679_v7 = vld [vmem:[%s3497_s4 + $0x40] sm:$0xff]  ;;  %v694_v8 = vld [vmem:[%s3497_s4 + $0xb8] sm:$0xff]  ;;  %v693_v9 = vld [vmem:[%s3497_s4 + $0xb0] sm:$0xff] }
  0x51   :  { %v678_v10 = vld [vmem:[%s3497_s4 + $0x38] sm:$0xff]  ;;  %v677_v11 = vld [vmem:[%s3497_s4 + $0x30] sm:$0xff]  ;;  %v692_v12 = vld [vmem:[%s3497_s4 + $0xa8] sm:$0xff] }
  0x52   :  { %v691_v13 = vld [vmem:[%s3497_s4 + $0xa0] sm:$0xff]  ;;  %v676_v14 = vld [vmem:[%s3497_s4 + $0x28] sm:$0xff]  ;;  %v690_v16 = vld [vmem:[%s3497_s4 + $0x98] sm:$0xff] }
  0x53   :  { %770 = vperm.xlu1 %2394, %v684_v62   ;;  %765 = vperm.xlu0 %2393, %v683_v63   ;;  %v675_v15 = vld [vmem:[%s3497_s4 + $0x20] sm:$0xff]  ;;  %v689_v17 = vld [vmem:[%s3497_s4 + $0x90] sm:$0xff]  ;;  %v674_v18 = vld [vmem:[%s3497_s4 + $0x18] sm:$0xff] }
  0x54   :  { %v673_v19 = vld [vmem:[%s3497_s4 + $0x10] sm:$0xff]  ;;  %v688_v20 = vld [vmem:[%s3497_s4 + $0x88] sm:$0xff]  ;;  %v687_v21 = vld [vmem:[%s3497_s4 + $0x80] sm:$0xff] }
  0x55   :  { %v672_v22 = vld [vmem:[%s3497_s4 + $0x8] sm:$0xff]  ;;  %v671_v23 = vld [vmem:[%s3497_s4] sm:$0xff]  ;;  %v1327_v24 = vld [vmem:[%s3499_s6 + $0xf8] sm:$0xff] }
  0x56   :  { %v1326_v25 = vld [vmem:[%s3499_s6 + $0xf0] sm:$0xff]  ;;  %v1311_v26 = vld [vmem:[%s3499_s6 + $0x78] sm:$0xff]  ;;  %v1325_v28 = vld [vmem:[%s3499_s6 + $0xe8] sm:$0xff] }
  0x57   :  { %840 = vperm.xlu1 %2394, %v698_v0   ;;  %835 = vperm.xlu0 %2393, %v697_v1   ;;  %v1310_v27 = vld [vmem:[%s3499_s6 + $0x70] sm:$0xff]  ;;  %v1324_v29 = vld [vmem:[%s3499_s6 + $0xe0] sm:$0xff]  ;;  %v1309_v30 = vld [vmem:[%s3499_s6 + $0x68] sm:$0xff] }
  0x58   :  { %v1308_v31 = vld [vmem:[%s3499_s6 + $0x60] sm:$0xff]  ;;  %v1323_v33 = vld [vmem:[%s3499_s6 + $0xd8] sm:$0xff]  ;;  %v1322_v34 = vld [vmem:[%s3499_s6 + $0xd0] sm:$0xff] }
  0x59   :  { %v2413_v32 = vld [vmem:[%s3496_s3 + $0x4] ss:$8 sps:$4 sm:$0xff]   ;;  %v1307_v35 = vld [vmem:[%s3499_s6 + $0x58] sm:$0xff]  ;;  %v1306_v36 = vld [vmem:[%s3499_s6 + $0x50] sm:$0xff] }
  0x5a   :  { %1055 = vmatprep.mubr.bf16.mxu1 %v2413_v32  ;;  %v1321_v37 = vld [vmem:[%s3499_s6 + $0xc8] sm:$0xff]  ;;  %v1320_v38 = vld [vmem:[%s3499_s6 + $0xc0] sm:$0xff]  ;;  %v1319_v41 = vld [vmem:[%s3499_s6 + $0xb8] sm:$0xff] }
  0x5b   :  { %760 = vperm.xlu1 %2394, %v682_v2   ;;  %755 = vperm.xlu0 %2393, %v681_v3   ;;  %v1305_v39 = vld [vmem:[%s3499_s6 + $0x48] sm:$0xff]  ;;  %v1304_v40 = vld [vmem:[%s3499_s6 + $0x40] sm:$0xff]  ;;  %v1318_v42 = vld [vmem:[%s3499_s6 + $0xb0] sm:$0xff] }
  0x5c   :  { %v1303_v43 = vld [vmem:[%s3499_s6 + $0x38] sm:$0xff]  ;;  %v1302_v44 = vld [vmem:[%s3499_s6 + $0x30] sm:$0xff]  ;;  %v1317_v47 = vld [vmem:[%s3499_s6 + $0xa8] sm:$0xff] }
  0x5d   :  { %v1316_v48 = vld [vmem:[%s3499_s6 + $0xa0] sm:$0xff]  ;;  %v1301_v50 = vld [vmem:[%s3499_s6 + $0x28] sm:$0xff]  ;;  %v1315_v53 = vld [vmem:[%s3499_s6 + $0x98] sm:$0xff] }
  0x5e   :  { %v1300_v51 = vld [vmem:[%s3499_s6 + $0x20] sm:$0xff]  ;;  %v1314_v54 = vld [vmem:[%s3499_s6 + $0x90] sm:$0xff]  ;;  %v1299_v57 = vld [vmem:[%s3499_s6 + $0x18] sm:$0xff] }
  0x5f   :  { %830 = vperm.xlu1 %2394, %v696_v4   ;;  %825 = vperm.xlu0 %2393, %v695_v5   ;;  %v1298_v58 = vld [vmem:[%s3499_s6 + $0x10] sm:$0xff]  ;;  %v1313_v60 = vld [vmem:[%s3499_s6 + $0x88] sm:$0xff]  ;;  %v1312_v61 = vld [vmem:[%s3499_s6 + $0x80] sm:$0xff] }
  0x60   :  { %v1297_v63 = vld [vmem:[%s3499_s6 + $0x8] sm:$0xff]  ;;  %v1296_v0 = vld [vmem:[%s3499_s6] sm:$0xff] }
  0x61   :  { %v1890_v3 = vld [vmem:[#allocation2] sm:$0x1] }
  0x63   :  { %750 = vperm.xlu1 %2394, %v680_v6   ;;  %745 = vperm.xlu0 %2393, %v679_v7  }
  0x67   :  { %820 = vperm.xlu1 %2394, %v694_v8   ;;  %815 = vperm.xlu0 %2393, %v693_v9  }
  0x6b   :  { %740 = vperm.xlu1 %2394, %v678_v10   ;;  %735 = vperm.xlu0 %2393, %v677_v11  }
  0x6f   :  { %810 = vperm.xlu1 %2394, %v692_v12   ;;  %805 = vperm.xlu0 %2393, %v691_v13  }
  0x73   :  { %730 = vperm.xlu1 %2394, %v676_v14   ;;  %725 = vperm.xlu0 %2393, %v675_v15  }
  0x77   :  { %800 = vperm.xlu1 %2394, %v690_v16   ;;  %795 = vperm.xlu0 %2393, %v689_v17  }
  0x7b   :  { %720 = vperm.xlu1 %2394, %v674_v18   ;;  %715 = vperm.xlu0 %2393, %v673_v19  }
  0x7f   :  { %790 = vperm.xlu1 %2394, %v688_v20   ;;  %785 = vperm.xlu0 %2393, %v687_v21  }
  0x80   :  { %v2917_v45 = vpop.permute.xlu1 %177  ;;  %v2919_v46 = vpop.permute.xlu0 %257 }
  0x83   :  { %710 = vperm.xlu1 %2394, %v672_v22   ;;  %705 = vperm.xlu0 %2393, %v671_v23  }
  0x86   :  { %v2927_v49 = vpop.permute.xlu1 %182  ;;  %v2935_v52 = vpop.permute.xlu0 %262 }
  0x87   :  { %1485 = vperm.xlu1 %2394, %v1327_v24   ;;  %1480 = vperm.xlu0 %2393, %v1326_v25  }
  0x8a   :  { %v2943_v55 = vpop.permute.xlu1 %252  ;;  %v2945_v56 = vpop.permute.xlu0 %247 }
  0x8b   :  { %1405 = vperm.xlu1 %2394, %v1311_v26   ;;  %1400 = vperm.xlu0 %2393, %v1310_v27  }
  0x8e   :  { %v2953_v59 = vpop.permute.xlu1 %172  ;;  %v2961_v62 = vpop.permute.xlu0 %167 }
  0x8f   :  { %1475 = vperm.xlu1 %2394, %v1325_v28   ;;  %1470 = vperm.xlu0 %2393, %v1324_v29  }
  0x92   :  { %v243_v1 = vpop.permute.xlu1 %242  ;;  %v238_v2 = vpop.permute.xlu0 %237 }
  0x93   :  { %1395 = vperm.xlu1 %2394, %v1309_v30   ;;  %1390 = vperm.xlu0 %2393, %v1308_v31  }
  0x96   :  { %v163_v4 = vpop.permute.xlu1 %162  ;;  %v2969_v5 = vpop.permute.xlu0 %157 }
  0x97   :  { %1465 = vperm.xlu1 %2394, %v1323_v33   ;;  %1460 = vperm.xlu0 %2393, %v1322_v34  }
  0x9a   :  { %v233_v6 = vpop.permute.xlu1 %232  ;;  %v2971_v7 = vpop.permute.xlu0 %227 }
  0x9b   :  { %1385 = vperm.xlu1 %2394, %v1307_v35   ;;  %1380 = vperm.xlu0 %2393, %v1306_v36  }
  0x9e   :  { %v2981_v12 = vpop.permute.xlu1 %152  ;;  %v2987_v15 = vpop.permute.xlu0 %147 }
  0x9f   :  { %1455 = vperm.xlu1 %2394, %v1321_v37   ;;  %1450 = vperm.xlu0 %2393, %v1320_v38  }
  0xa2   :  { %v2997_v20 = vpop.permute.xlu1 %222  ;;  %v3003_v23 = vpop.permute.xlu0 %217 }
  0xa3   :  { %1375 = vperm.xlu1 %2394, %v1305_v39   ;;  %1370 = vperm.xlu0 %2393, %v1304_v40  }
  0xa6   :  { %v3011_v28 = vpop.permute.xlu1 %142  ;;  %v3013_v31 = vpop.permute.xlu0 %137 }
  0xa7   :  { %1445 = vperm.xlu1 %2394, %v1319_v41   ;;  %1440 = vperm.xlu0 %2393, %v1318_v42  }
  0xaa   :  { %v3015_v36 = vpop.permute.xlu1 %212  ;;  %v3017_v39 = vpop.permute.xlu0 %207 }
  0xab   :  { %1365 = vperm.xlu1 %2394, %v1303_v43   ;;  %1360 = vperm.xlu0 %2393, %v1302_v44  }
  0xaf   :  { %1435 = vperm.xlu1 %2394, %v1317_v47   ;;  %1430 = vperm.xlu0 %2393, %v1316_v48   ;;  %v3021_v48 = vpop.permute.xlu1 %132 }
  0xb3   :  { %1355 = vperm.xlu1 %2394, %v1301_v50   ;;  %1350 = vperm.xlu0 %2393, %v1300_v51  }
  0xb7   :  { %1425 = vperm.xlu1 %2394, %v1315_v53   ;;  %1420 = vperm.xlu0 %2393, %v1314_v54  }
  0xbb   :  { %1345 = vperm.xlu1 %2394, %v1299_v57   ;;  %1340 = vperm.xlu0 %2393, %v1298_v58   ;;  %v3026_v58 = vpop.permute.xlu0 %127 }
  0xbf   :  { %1415 = vperm.xlu1 %2394, %v1313_v60   ;;  %1410 = vperm.xlu0 %2393, %v1312_v61  }
  0xc3   :  { %1335 = vperm.xlu1 %2394, %v1297_v63   ;;  %1330 = vperm.xlu0 %2393, %v1296_v0  }
  0xc7   :  { %1893 = vperm.xlu0 %2393, %v1890_v3  }
  0xd0   :  { %v2973_v8 = vpop.f32.mrf.mxu0  ;;  %v2975_v9 = vpop.f32.mrf.mxu1 }
  0xd1   :  { %3503 = vst [vmem:[#allocation6_spill] sm:$0xff] %v2973_v8 }
  0xd2   :  { %v2977_v10 = vpop.f32.mrf.mxu0  ;;  %v2979_v11 = vpop.f32.mrf.mxu1 }
  0xd3   :  { %3504 = vst [vmem:[#allocation7_spill] sm:$0xff] %v2977_v10  ;;  %3505 = vst [vmem:[#allocation8_spill] sm:$0xff] %v2979_v11  ;;  %v198_v11 = vpop.permute.xlu0 %197 }
  0xd4   :  { %v2983_v13 = vpop.f32.mrf.mxu0  ;;  %v2985_v14 = vpop.f32.mrf.mxu1 }
  0xd6   :  { %v2989_v16 = vpop.f32.mrf.mxu0  ;;  %v2991_v17 = vpop.f32.mrf.mxu1 }
  0xd7   :  { %3506 = vst [vmem:[#allocation9_spill] sm:$0xff] %v2989_v16 }
  0xd8   :  { %v2993_v18 = vpop.f32.mrf.mxu0  ;;  %v2995_v19 = vpop.f32.mrf.mxu1 }
  0xda   :  { %v2999_v21 = vpop.f32.mrf.mxu0  ;;  %v3001_v22 = vpop.f32.mrf.mxu1 }
  0xdc   :  { %v3005_v24 = vpop.f32.mrf.mxu0  ;;  %v2375_v25 = vpop.f32.mrf.mxu1 }
  0xde   :  { %v3007_v26 = vpop.f32.mrf.mxu0  ;;  %v3009_v27 = vpop.f32.mrf.mxu1 }
  0xe0   :  { %v2362_v29 = vpop.f32.mrf.mxu0  ;;  %v2378_v30 = vpop.f32.mrf.mxu1 }
  0xe1   :  { %v537_v63 = vadd.f32 %v2378_v30, %v238_v2 }
  0xe2   :  { %v464_v32 = vpop.f32.mrf.mxu0  ;;  %v528_v33 = vpop.f32.mrf.mxu1 }
  0xe3   :  { %v529_v8 = vadd.f32 %v528_v33, %v2971_v7 }
  0xe4   :  { %v2363_v34 = vpop.f32.mrf.mxu0  ;;  %v2379_v35 = vpop.f32.mrf.mxu1 }
  0xe5   :  { %v3023_v50 = vadd.f32 %v2379_v35, %v243_v1 }
  0xe6   :  { %v467_v37 = vpop.f32.mrf.mxu0  ;;  %v531_v38 = vpop.f32.mrf.mxu1 }
  0xe7   :  { %v586_v35 = vmul.f32 0.1, %v3023_v50 }
  0xe8   :  { %v2366_v40 = vpop.f32.mrf.mxu0  ;;  %v2382_v41 = vpop.f32.mrf.mxu1 }
  0xe9   :  { %v489_v42 = vadd.f32 %v2366_v40, %v2917_v45  ;;  %v553_v43 = vadd.f32 %v2382_v41, %v2919_v46  ;;  %v3030_v46 = vadd.f32 %v2363_v34, %v163_v4  ;;  %v585_v34 = vmul.f32 0.1, %v537_v63 }
  0xea   :  { %v480_v44 = vpop.f32.mrf.mxu0  ;;  %v544_v47 = vpop.f32.mrf.mxu1 }
  0xeb   :  { %v573_v51 = vmul.f32 0.1, %v489_v42  ;;  %v545_v53 = vadd.f32 %v544_v47, %v2945_v56  ;;  %v589_v60 = vmul.f32 0.1, %v553_v43  ;;  %v481_v0 = vadd.f32 %v480_v44, %v2961_v62 }
  0xec   :  { %v2367_v54 = vpop.f32.mrf.mxu0  ;;  %v2383_v57 = vpop.f32.mrf.mxu1  ;;  %v532_v47 = vadd.f32 %v531_v38, %v233_v6  ;;  %v473_v62 = vadd.f32 %v2362_v29, %v2969_v5 }
  0xed   :  { %v492_v61 = vadd.f32 %v2367_v54, %v2927_v49  ;;  %v556_v45 = vadd.f32 %v2383_v57, %v2935_v52  ;;  %v605_v10 = vmax.f32 %v489_v42, %v573_v51  ;;  %v587_v16 = vmul.f32 0.1, %v545_v53  ;;  %v203_v54 = vpop.permute.xlu1 %202 }
  0xee   :  { %v483_v3 = vpop.f32.mrf.mxu0  ;;  %v547_v1 = vpop.f32.mrf.mxu1  ;;  %v621_v52 = vmax.f32 %v553_v43, %v589_v60  ;;  %v571_v44 = vmul.f32 0.1, %v481_v0  ;;  %v468_v42 = vadd.f32 %v467_v37, %v2981_v12  ;;  %v524_v60 = vadd.f32 %v2375_v25, %v2997_v20 }
  0xef   :  { %v574_v40 = vmul.f32 0.1, %v492_v61  ;;  %v590_v56 = vmul.f32 0.1, %v556_v45  ;;  %v484_v41 = vadd.f32 %v483_v3, %v2953_v59  ;;  %v548_v49 = vadd.f32 %v547_v1, %v2943_v55 }
  0xf0   :  { %v570_v59 = vmul.f32 0.1, %v3030_v46  ;;  %v619_v55 = vmax.f32 %v545_v53, %v587_v16  ;;  %v584_v5 = vmul.f32 0.1, %v532_v47  ;;  %v569_v29 = vmul.f32 0.1, %v473_v62  ;;  %v118_v53 = vpop.permute.xlu0 %117 }
  0xf1   :  { %v606_v2 = vmax.f32 %v492_v61, %v574_v40  ;;  %v622_v4 = vmax.f32 %v556_v45, %v590_v56  ;;  %v572_v30 = vmul.f32 0.1, %v484_v41  ;;  %v588_v57 = vmul.f32 0.1, %v548_v49  ;;  %v123_v33 = vpop.permute.xlu1 %122 }
  0xf2   :  { %v618_v61 = vmax.f32 %v3023_v50, %v586_v35  ;;  %v465_v45 = vadd.f32 %v464_v32, %v2987_v15  ;;  %v603_v3 = vmax.f32 %v481_v0, %v571_v44  ;;  %v617_v12 = vmax.f32 %v537_v63, %v585_v34 }
  0xf3   :  { %v662_v6 = vpack.c.bf16 %v606_v2, %v605_v10  ;;  %v670_v38 = vpack.c.bf16 %v622_v4, %v621_v52  ;;  %v604_v51 = vmax.f32 %v484_v41, %v572_v30  ;;  %v620_v43 = vmax.f32 %v548_v49, %v588_v57  ;;  %v3507_v57 = vld [vmem:[#allocation6_spill] sm:$0xff] }
  0xf4   :  { %v521_v10 = vadd.f32 %v2995_v19, %v3003_v23  ;;  %v583_v16 = vmul.f32 0.1, %v529_v8  ;;  %v460_v37 = vadd.f32 %v3005_v24, %v3011_v28  ;;  %v602_v20 = vmax.f32 %v3030_v46, %v570_v59 }
  0xf5   :  { %2102 = vmatprep.subr.bf16.mxu1 %v670_v38  ;;  %v669_v7 = vpack.c.bf16 %v620_v43, %v619_v55  ;;  %v568_v25 = vmul.f32 0.1, %v468_v42  ;;  %v661_v50 = vpack.c.bf16 %v604_v51, %v603_v3  ;;  %v582_v1 = vmul.f32 0.1, %v524_v60  ;;  %v3509_v55 = vld [vmem:[#allocation9_spill] sm:$0xff]  ;;  %v3510_v3 = vld [vmem:[#allocation7_spill] sm:$0xff] }
  0xf6   :  { %2103 = vmatpush3.bf16.msra.mxu1 %v662_v6  ;;  %v516_v15 = vadd.f32 %v3009_v27, %v3015_v36  ;;  %v616_v32 = vmax.f32 %v532_v47, %v584_v5  ;;  %v668_v0 = vpack.c.bf16 %v618_v61, %v617_v12  ;;  %v457_v19 = vadd.f32 %v2993_v18, %v3013_v31  ;;  %v193_v36 = vpop.permute.xlu1 %192 }
  0xf7   :  { %2104 = vmatprep.subr.bf16.mxu1 %v669_v7  ;;  %v601_v23 = vmax.f32 %v473_v62, %v569_v29  ;;  %v567_v63 = vmul.f32 0.1, %v465_v45  ;;  %v581_v35 = vmul.f32 0.1, %v521_v10  ;;  %v513_v24 = vadd.f32 %v3001_v22, %v3017_v39 }
  0xf8   :  { %v615_v28 = vmax.f32 %v529_v8, %v583_v16  ;;  %v566_v46 = vmul.f32 0.1, %v460_v37  ;;  %v452_v40 = vadd.f32 %v3007_v26, %v3021_v48  ;;  %v600_v27 = vmax.f32 %v468_v42, %v568_v25  ;;  %v188_v8 = vpop.permute.xlu0 %187 }
  0xf9   :  { %v660_v56 = vpack.c.bf16 %v602_v20, %v601_v23  ;;  %v508_v41 = vadd.f32 %v2985_v14, %v203_v54  ;;  %v614_v47 = vmax.f32 %v524_v60, %v582_v1  ;;  %v580_v18 = vmul.f32 0.1, %v516_v15 }
  0xfa   :  { %2105 = vmatpush3.bf16.msra.mxu1 %v661_v50  ;;  %v667_v31 = vpack.c.bf16 %v616_v32, %v615_v28  ;;  %v565_v49 = vmul.f32 0.1, %v457_v19  ;;  %v449_v52 = vadd.f32 %v2999_v21, %v3026_v58  ;;  %v599_v2 = vmax.f32 %v465_v45, %v567_v63  ;;  %v113_v6 = vpop.permute.xlu1 %112  ;;  %v2416_v28 = vld [vmem:[%s3496_s3 + $0x10] ss:$8 sps:$4 sm:$0xff]  }
  0xfb   :  { %2106 = vmatprep.subr.bf16.mxu1 %v668_v0  ;;  %v505_v22 = vadd.f32 %v2975_v9, %v198_v11  ;;  %v613_v39 = vmax.f32 %v521_v10, %v581_v35  ;;  %v579_v4 = vmul.f32 0.1, %v513_v24  ;;  %v444_v26 = vadd.f32 %v2983_v13, %v123_v33  ;;  %v3508_v11 = vld [vmem:[#allocation8_spill] sm:$0xff]  ;;  %v2411_v35 = vld [vmem:[%s3496_s3] ss:$8 sps:$4 sm:$0xff]  }
  0xfc   :  { %v598_v48 = vmax.f32 %v460_v37, %v566_v46  ;;  %v564_v30 = vmul.f32 0.1, %v452_v40  ;;  %v659_v14 = vpack.c.bf16 %v600_v27, %v599_v2  ;;  %v578_v54 = vmul.f32 0.1, %v508_v41  ;;  %v108_v61 = vpop.permute.xlu0 %107  ;;  %v2417_v46 = vld [vmem:[%s3496_s3 + $0x24] ss:$8 sps:$4 sm:$0xff]  }
  0xfd   :  { %v500_v62 = vadd.f32 %v2991_v17, %v193_v36  ;;  %v612_v34 = vmax.f32 %v516_v15, %v580_v18  ;;  %v666_v44 = vpack.c.bf16 %v614_v47, %v613_v39  ;;  %v441_v21 = vadd.f32 %v3507_v57, %v118_v53  ;;  %v2422_v27 = vld [vmem:[%s3496_s3 + $0x30] ss:$8 sps:$4 sm:$0xff]   ;;  %v2423_v36 = vld [vmem:[%s3496_s3 + $0x44] ss:$8 sps:$4 sm:$0xff]   ;;  %v2426_v47 = vld [vmem:[%s3496_s3 + $0x54] ss:$8 sps:$4 sm:$0xff]  }
  0xfe   :  { %2107 = vmatpush3.bf16.msra.mxu1 %v660_v56  ;;  %v597_v58 = vmax.f32 %v457_v19, %v565_v49  ;;  %v563_v59 = vmul.f32 0.1, %v449_v52  ;;  %v577_v9 = vmul.f32 0.1, %v505_v22  ;;  %v497_v38 = vadd.f32 %v3508_v11, %v188_v8  ;;  %v2420_v56 = vld [vmem:[%s3496_s3 + $0x34] ss:$8 sps:$4 sm:$0xff]  }
  0xff   :  { %2108 = vmatprep.subr.bf16.mxu1 %v667_v31  ;;  %v611_v42 = vmax.f32 %v513_v24, %v579_v4  ;;  %v562_v13 = vmul.f32 0.1, %v444_v26  ;;  %v436_v51 = vadd.f32 %v3509_v55, %v113_v6  ;;  %v596_v60 = vmax.f32 %v452_v40, %v564_v30  ;;  %v2414_v24 = vld [vmem:[%s3496_s3 + $0x14] ss:$8 sps:$4 sm:$0xff]   ;;  %v2419_v40 = vld [vmem:[%s3496_s3 + $0x20] ss:$8 sps:$4 sm:$0xff]   ;;  %v3158_v6 = vpop.permute.xlu1 %860 }
 0x100   :  { %v658_v43 = vpack.c.bf16 %v598_v48, %v597_v58  ;;  %v610_v17 = vmax.f32 %v508_v41, %v578_v54  ;;  %v576_v5 = vmul.f32 0.1, %v500_v62  ;;  %v561_v45 = vmul.f32 0.1, %v441_v21  ;;  %v2425_v41 = vld [vmem:[%s3496_s3 + $0x40] ss:$8 sps:$4 sm:$0xff]  }
 0x101   :  { %v665_v29 = vpack.c.bf16 %v612_v34, %v611_v42  ;;  %v433_v7 = vadd.f32 %v3510_v3, %v108_v61  ;;  %v595_v33 = vmax.f32 %v449_v52, %v563_v59  ;;  %v609_v10 = vmax.f32 %v505_v22, %v577_v9  ;;  %v2428_v18 = vld [vmem:[%s3496_s3 + $0x50] ss:$8 sps:$4 sm:$0xff]   ;;  %v2429_v31 = vld [vmem:[%s3496_s3 + $0x64] ss:$8 sps:$4 sm:$0xff]   ;;  %v2431_v49 = vld [vmem:[%s3496_s3 + $0x60] ss:$8 sps:$4 sm:$0xff]  }
 0x102   :  { %2109 = vmatpush3.bf16.msra.mxu1 %v659_v14  ;;  %v575_v12 = vmul.f32 0.1, %v497_v38  ;;  %v594_v16 = vmax.f32 %v444_v26, %v562_v13  ;;  %v560_v37 = vmul.f32 0.1, %v436_v51  ;;  %v608_v25 = vmax.f32 %v500_v62, %v576_v5  ;;  %v2432_v52 = vld [vmem:[%s3496_s3 + $0x74] ss:$8 sps:$4 sm:$0xff]  }
 0x103   :  { %2110 = vmatprep.subr.bf16.mxu1 %v666_v44  ;;  %v657_v20 = vpack.c.bf16 %v596_v60, %v595_v33  ;;  %v664_v50 = vpack.c.bf16 %v610_v17, %v609_v10  ;;  %v593_v53 = vmax.f32 %v441_v21, %v561_v45  ;;  %v559_v1 = vmul.f32 0.1, %v433_v7  ;;  %v2434_v2 = vld [vmem:[%s3496_s3 + $0x70] ss:$8 sps:$4 sm:$0xff]   ;;  %v2435_v8 = vld [vmem:[%s3496_s3 + $0x84] ss:$8 sps:$4 sm:$0xff]   ;;  %v3150_v21 = vpop.permute.xlu0 %855  ;;  %v3162_v11 = vpop.permute.xlu1 %780 }
 0x104   :  { %v607_v15 = vmax.f32 %v497_v38, %v575_v12  ;;  %v592_v0 = vmax.f32 %v436_v51, %v560_v37  ;;  %v2437_v22 = vld [vmem:[%s3496_s3 + $0x80] ss:$8 sps:$4 sm:$0xff]   ;;  %v2438_v39 = vld [vmem:[%s3496_s3 + $0x94] ss:$8 sps:$4 sm:$0xff]   ;;  %v2440_v4 = vld [vmem:[%s3496_s3 + $0x90] ss:$8 sps:$4 sm:$0xff]  }
 0x105   :  { %v656_v32 = vpack.c.bf16 %v594_v16, %v593_v53  ;;  %v591_v23 = vmax.f32 %v433_v7, %v559_v1  ;;  %v2441_v26 = vld [vmem:[%s3496_s3 + $0xa4] ss:$8 sps:$4 sm:$0xff]   ;;  %v2443_v48 = vld [vmem:[%s3496_s3 + $0xa0] ss:$8 sps:$4 sm:$0xff]   ;;  %v2444_v30 = vld [vmem:[%s3496_s3 + $0xb4] ss:$8 sps:$4 sm:$0xff]  }
 0x106   :  { %2111 = vmatpush3.bf16.msra.mxu1 %v658_v43  ;;  %v663_v19 = vpack.c.bf16 %v608_v25, %v607_v15  ;;  %v2446_v14 = vld [vmem:[%s3496_s3 + $0xb0] ss:$8 sps:$4 sm:$0xff]   ;;  %v2447_v54 = vld [vmem:[%s3496_s3 + $0xc4] ss:$8 sps:$4 sm:$0xff]   ;;  %v2449_v62 = vld [vmem:[%s3496_s3 + $0xc0] ss:$8 sps:$4 sm:$0xff]  }
 0x107   :  { %2112 = vmatprep.subr.bf16.mxu1 %v665_v29  ;;  %v655_v63 = vpack.c.bf16 %v592_v0, %v591_v23  ;;  %v2450_v34 = vld [vmem:[%s3496_s3 + $0xd4] ss:$8 sps:$4 sm:$0xff]   ;;  %v2452_v44 = vld [vmem:[%s3496_s3 + $0xd0] ss:$8 sps:$4 sm:$0xff]   ;;  %v2453_v57 = vld [vmem:[%s3496_s3 + $0xe4] ss:$8 sps:$4 sm:$0xff]   ;;  %v3160_v9 = vpop.permute.xlu0 %775  ;;  %v3169_v13 = vpop.permute.xlu1 %850 }
 0x108   :  { %v2455_v58 = vld [vmem:[%s3496_s3 + $0xe0] ss:$8 sps:$4 sm:$0xff]   ;;  %v2456_v59 = vld [vmem:[%s3496_s3 + $0xf4] ss:$8 sps:$4 sm:$0xff]   ;;  %v2458_v38 = vld [vmem:[%s3496_s3 + $0xf0] ss:$8 sps:$4 sm:$0xff]  }
 0x10a   :  { %2113 = vmatpush3.bf16.msra.mxu1 %v657_v20 }
 0x10b   :  { %2114 = vmatprep.subr.bf16.mxu1 %v664_v50  ;;  %v3167_v42 = vpop.permute.xlu0 %845  ;;  %v3173_v51 = vpop.permute.xlu1 %770 }
 0x10e   :  { %2115 = vmatpush3.bf16.msra.mxu1 %v656_v32 }
 0x10f   :  { %2116 = vmatprep.subr.bf16.mxu1 %v663_v19  ;;  %v3171_v55 = vpop.permute.xlu0 %765  ;;  %v3177_v60 = vpop.permute.xlu1 %840 }
 0x112   :  { %2117 = vmatpush3.bf16.msra.mxu1 %v655_v63 }
 0x113   :  { %v3175_v43 = vpop.permute.xlu0 %835  ;;  %v3181_v17 = vpop.permute.xlu1 %760 }
 0x115   :  { %1056 = vmatmul.mubr.bf16.vlgmr.msra.gmra.mxu1 %v2411_v35 }
 0x116   :  { %1063 = vmatprep.mubr.bf16.mxu1 %v2414_v24 }
 0x117   :  { %v3179_v61 = vpop.permute.xlu0 %755  ;;  %v3185_v29 = vpop.permute.xlu1 %830 }
 0x11b   :  { %v3183_v5 = vpop.permute.xlu0 %825  ;;  %v3189_v3 = vpop.permute.xlu1 %750 }
 0x11d   :  { %1064 = vmatmul.mubr.bf16.gmra.mxu1 %v2416_v28 }
 0x11e   :  { %1071 = vmatprep.mubr.bf16.mxu1 %v2417_v46 }
 0x11f   :  { %v3187_v45 = vpop.permute.xlu0 %745  ;;  %v3193_v33 = vpop.permute.xlu1 %820 }
 0x123   :  { %v3191_v7 = vpop.permute.xlu0 %815  ;;  %v741_v12 = vpop.permute.xlu1 %740 }
 0x125   :  { %1072 = vmatmul.mubr.bf16.gmra.mxu1 %v2419_v40 }
 0x126   :  { %1079 = vmatprep.mubr.bf16.mxu1 %v2420_v56 }
 0x127   :  { %v736_v10 = vpop.permute.xlu0 %735  ;;  %v3197_v37 = vpop.permute.xlu1 %810 }
 0x12b   :  { %v3195_v16 = vpop.permute.xlu0 %805  ;;  %v731_v25 = vpop.permute.xlu1 %730 }
 0x12d   :  { %1080 = vmatmul.mubr.bf16.gmra.mxu1 %v2422_v27 }
 0x12e   :  { %1087 = vmatprep.mubr.bf16.mxu1 %v2423_v36 }
 0x12f   :  { %v726_v20 = vpop.permute.xlu0 %725  ;;  %v3201_v53 = vpop.permute.xlu1 %800 }
 0x133   :  { %v3199_v50 = vpop.permute.xlu0 %795  ;;  %v721_v15 = vpop.permute.xlu1 %720 }
 0x135   :  { %1088 = vmatmul.mubr.bf16.gmra.mxu1 %v2425_v41 }
 0x136   :  { %1095 = vmatprep.mubr.bf16.mxu1 %v2426_v47 }
 0x137   :  { %v716_v1 = vpop.permute.xlu0 %715  ;;  %v3205_v19 = vpop.permute.xlu1 %790 }
 0x13b   :  { %v3203_v32 = vpop.permute.xlu0 %785  ;;  %v711_v56 = vpop.permute.xlu1 %710 }
 0x13d   :  { %1096 = vmatmul.mubr.bf16.gmra.mxu1 %v2428_v18 }
 0x13e   :  { %1103 = vmatprep.mubr.bf16.mxu1 %v2429_v31 }
 0x13f   :  { %v706_v35 = vpop.permute.xlu0 %705 }
 0x145   :  { %1104 = vmatmul.mubr.bf16.gmra.mxu1 %v2431_v49 }
 0x146   :  { %1111 = vmatprep.mubr.bf16.mxu1 %v2432_v52 }
 0x14d   :  { %1112 = vmatmul.mubr.bf16.gmra.mxu1 %v2434_v2 }
 0x14e   :  { %1119 = vmatprep.mubr.bf16.mxu1 %v2435_v8 }
 0x155   :  { %1120 = vmatmul.mubr.bf16.gmra.mxu1 %v2437_v22 }
 0x156   :  { %1127 = vmatprep.mubr.bf16.mxu1 %v2438_v39 }
 0x15d   :  { %1128 = vmatmul.mubr.bf16.gmra.mxu1 %v2440_v4 }
 0x15e   :  { %1135 = vmatprep.mubr.bf16.mxu1 %v2441_v26 }
 0x165   :  { %1136 = vmatmul.mubr.bf16.gmra.mxu1 %v2443_v48 }
 0x166   :  { %1143 = vmatprep.mubr.bf16.mxu1 %v2444_v30 }
 0x16d   :  { %1144 = vmatmul.mubr.bf16.gmra.mxu1 %v2446_v14 }
 0x16e   :  { %1151 = vmatprep.mubr.bf16.mxu1 %v2447_v54 }
 0x175   :  { %1152 = vmatmul.mubr.bf16.gmra.mxu1 %v2449_v62 }
 0x176   :  { %1159 = vmatprep.mubr.bf16.mxu1 %v2450_v34 }
 0x17d   :  { %1160 = vmatmul.mubr.bf16.gmra.mxu1 %v2452_v44 }
 0x17e   :  { %1167 = vmatprep.mubr.bf16.mxu1 %v2453_v57 }
 0x185   :  { %1168 = vmatmul.mubr.bf16.gmra.mxu1 %v2455_v58 }
 0x186   :  { %1175 = vmatprep.mubr.bf16.mxu1 %v2456_v59 }
 0x18d   :  { %1176 = vmatmul.mubr.bf16.gmra.mxu1 %v2458_v38 }
 0x1d5   :  { %v2118_v0 = vpop.f32.mrf.mxu1 }
 0x1d7   :  { %v2119_v23 = vpop.f32.mrf.mxu1 }
 0x1d8   :  { %v2120_v63 = vadd.f32 %v2119_v23, %v2118_v0 }
 0x1d9   :  { %v2121_v24 = vpop.f32.mrf.mxu1 }
 0x1da   :  { %v1058_v28 = vadd.f32 %v2120_v63, %v706_v35 }
 0x1db   :  { %v2122_v46 = vpop.f32.mrf.mxu1 }
 0x1dc   :  { %v2123_v40 = vadd.f32 %v2122_v46, %v2121_v24  ;;  %v1184_v36 = vmul.f32 0.1, %v1058_v28 }
 0x1dd   :  { %v2124_v27 = vpop.f32.mrf.mxu1 }
 0x1de   :  { %v1061_v41 = vadd.f32 %v2123_v40, %v711_v56  ;;  %v1216_v52 = vmax.f32 %v1058_v28, %v1184_v36 }
 0x1df   :  { %v2125_v47 = vpop.f32.mrf.mxu1 }
 0x1e0   :  { %v1185_v18 = vmul.f32 0.1, %v1061_v41  ;;  %v2126_v31 = vadd.f32 %v2125_v47, %v2124_v27 }
 0x1e1   :  { %v2127_v49 = vpop.f32.mrf.mxu1 }
 0x1e2   :  { %v1217_v2 = vmax.f32 %v1061_v41, %v1185_v18  ;;  %v1066_v8 = vadd.f32 %v2126_v31, %v716_v1 }
 0x1e3   :  { %v2128_v22 = vpop.f32.mrf.mxu1 }
 0x1e4   :  { %v3207_v39 = vpack.c.bf16 %v1217_v2, %v1216_v52  ;;  %v2129_v4 = vadd.f32 %v2128_v22, %v2127_v49  ;;  %v1186_v48 = vmul.f32 0.1, %v1066_v8 }
 0x1e5   :  { %v2130_v26 = vpop.f32.mrf.mxu1 }
 0x1e6   :  { %v1069_v30 = vadd.f32 %v2129_v4, %v721_v15  ;;  %v1218_v44 = vmax.f32 %v1066_v8, %v1186_v48 }
 0x1e7   :  { %v2131_v14 = vpop.f32.mrf.mxu1 }
 0x1e8   :  { %v1187_v54 = vmul.f32 0.1, %v1069_v30  ;;  %v2132_v62 = vadd.f32 %v2131_v14, %v2130_v26 }
 0x1e9   :  { %v2133_v34 = vpop.f32.mrf.mxu1 }
 0x1ea   :  { %v1219_v57 = vmax.f32 %v1069_v30, %v1187_v54  ;;  %v1074_v58 = vadd.f32 %v2132_v62, %v726_v20 }
 0x1eb   :  { %v2134_v59 = vpop.f32.mrf.mxu1 }
 0x1ec   :  { %v3209_v38 = vpack.c.bf16 %v1219_v57, %v1218_v44  ;;  %v2135_v0 = vadd.f32 %v2134_v59, %v2133_v34  ;;  %v1188_v1 = vmul.f32 0.1, %v1074_v58 }
 0x1ed   :  { %v2136_v23 = vpop.f32.mrf.mxu1 }
 0x1ee   :  { %v1077_v63 = vadd.f32 %v2135_v0, %v731_v25  ;;  %v1220_v40 = vmax.f32 %v1074_v58, %v1188_v1 }
 0x1ef   :  { %v2137_v35 = vpop.f32.mrf.mxu1 }
 0x1f0   :  { %v1189_v24 = vmul.f32 0.1, %v1077_v63  ;;  %v2138_v28 = vadd.f32 %v2137_v35, %v2136_v23 }
 0x1f1   :  { %v2139_v46 = vpop.f32.mrf.mxu1 }
 0x1f2   :  { %v1221_v15 = vmax.f32 %v1077_v63, %v1189_v24  ;;  %v1082_v56 = vadd.f32 %v2138_v28, %v736_v10  ;;  %v2461_v10 = vld [vmem:[%s3498_s5 + $0x4] ss:$8 sps:$4 sm:$0xff]  }
 0x1f3   :  { %v2140_v27 = vpop.f32.mrf.mxu1  ;;  %1680 = vmatprep.mubr.bf16.mxu0 %v2461_v10 }
 0x1f4   :  { %v3211_v36 = vpack.c.bf16 %v1221_v15, %v1220_v40  ;;  %v2141_v41 = vadd.f32 %v2140_v27, %v2139_v46  ;;  %v1190_v20 = vmul.f32 0.1, %v1082_v56 }
 0x1f5   :  { %v2142_v47 = vpop.f32.mrf.mxu1 }
 0x1f6   :  { %v1085_v18 = vadd.f32 %v2141_v41, %v741_v12  ;;  %v1222_v8 = vmax.f32 %v1082_v56, %v1190_v20 }
 0x1f7   :  { %v2143_v31 = vpop.f32.mrf.mxu1 }
 0x1f8   :  { %v1191_v49 = vmul.f32 0.1, %v1085_v18  ;;  %v2144_v52 = vadd.f32 %v2143_v31, %v2142_v47 }
 0x1f9   :  { %v2145_v2 = vpop.f32.mrf.mxu1 }
 0x1fa   :  { %v1223_v25 = vmax.f32 %v1085_v18, %v1191_v49  ;;  %v1090_v22 = vadd.f32 %v2144_v52, %v3187_v45 }
 0x1fb   :  { %v2146_v4 = vpop.f32.mrf.mxu1 }
 0x1fc   :  { %v3217_v26 = vpack.c.bf16 %v1223_v25, %v1222_v8  ;;  %v2147_v48 = vadd.f32 %v2146_v4, %v2145_v2  ;;  %v1192_v14 = vmul.f32 0.1, %v1090_v22 }
 0x1fd   :  { %v2148_v30 = vpop.f32.mrf.mxu1 }
 0x1fe   :  { %v1093_v12 = vadd.f32 %v2147_v48, %v3189_v3  ;;  %v1224_v57 = vmax.f32 %v1090_v22, %v1192_v14 }
 0x1ff   :  { %v2149_v54 = vpop.f32.mrf.mxu1 }
 0x200   :  { %v1193_v62 = vmul.f32 0.1, %v1093_v12  ;;  %v2150_v34 = vadd.f32 %v2149_v54, %v2148_v30 }
 0x201   :  { %v2151_v44 = vpop.f32.mrf.mxu1 }
 0x202   :  { %v1225_v58 = vmax.f32 %v1093_v12, %v1193_v62  ;;  %v1098_v45 = vadd.f32 %v2150_v34, %v3179_v61 }
 0x203   :  { %v2152_v59 = vpop.f32.mrf.mxu1 }
 0x204   :  { %v3221_v0 = vpack.c.bf16 %v1225_v58, %v1224_v57  ;;  %v2153_v23 = vadd.f32 %v2152_v59, %v2151_v44  ;;  %v1194_v63 = vmul.f32 0.1, %v1098_v45 }
 0x205   :  { %v2154_v1 = vpop.f32.mrf.mxu1 }
 0x206   :  { %v1101_v35 = vadd.f32 %v2153_v23, %v3181_v17  ;;  %v1226_v40 = vmax.f32 %v1098_v45, %v1194_v63 }
 0x207   :  { %v2155_v24 = vpop.f32.mrf.mxu1 }
 0x208   :  { %v1195_v28 = vmul.f32 0.1, %v1101_v35  ;;  %v2156_v46 = vadd.f32 %v2155_v24, %v2154_v1 }
 0x209   :  { %v2157_v3 = vpop.f32.mrf.mxu1 }
 0x20a   :  { %v1227_v15 = vmax.f32 %v1101_v35, %v1195_v28  ;;  %v1106_v56 = vadd.f32 %v2156_v46, %v3171_v55 }
 0x20b   :  { %v2158_v27 = vpop.f32.mrf.mxu1 }
 0x20c   :  { %v3225_v41 = vpack.c.bf16 %v1227_v15, %v1226_v40  ;;  %v2159_v61 = vadd.f32 %v2158_v27, %v2157_v3  ;;  %v1196_v20 = vmul.f32 0.1, %v1106_v56 }
 0x20d   :  { %v2160_v47 = vpop.f32.mrf.mxu1 }
 0x20e   :  { %v1109_v18 = vadd.f32 %v2159_v61, %v3173_v51  ;;  %v1228_v2 = vmax.f32 %v1106_v56, %v1196_v20 }
 0x20f   :  { %v2161_v31 = vpop.f32.mrf.mxu1 }
 0x210   :  { %v1197_v49 = vmul.f32 0.1, %v1109_v18  ;;  %v2162_v52 = vadd.f32 %v2161_v31, %v2160_v47 }
 0x211   :  { %v2163_v17 = vpop.f32.mrf.mxu1 }
 0x212   :  { %v1229_v8 = vmax.f32 %v1109_v18, %v1197_v49  ;;  %v1114_v25 = vadd.f32 %v2162_v52, %v3160_v9 }
 0x213   :  { %v2164_v22 = vpop.f32.mrf.mxu1 }
 0x214   :  { %v3229_v4 = vpack.c.bf16 %v1229_v8, %v1228_v2  ;;  %v2165_v55 = vadd.f32 %v2164_v22, %v2163_v17  ;;  %v1198_v48 = vmul.f32 0.1, %v1114_v25 }
 0x215   :  { %v2166_v10 = vpop.f32.mrf.mxu1 }
 0x216   :  { %v1117_v30 = vadd.f32 %v2165_v55, %v3162_v11  ;;  %v1230_v62 = vmax.f32 %v1114_v25, %v1198_v48 }
 0x217   :  { %v2167_v14 = vpop.f32.mrf.mxu1 }
 0x218   :  { %v1199_v12 = vmul.f32 0.1, %v1117_v30  ;;  %v2168_v54 = vadd.f32 %v2167_v14, %v2166_v10 }
 0x219   :  { %v2169_v51 = vpop.f32.mrf.mxu1 }
 0x21a   :  { %v1231_v34 = vmax.f32 %v1117_v30, %v1199_v12  ;;  %v1122_v44 = vadd.f32 %v2168_v54, %v3203_v32 }
 0x21b   :  { %v2170_v57 = vpop.f32.mrf.mxu1 }
 0x21c   :  { %v3233_v58 = vpack.c.bf16 %v1231_v34, %v1230_v62  ;;  %v2171_v9 = vadd.f32 %v2170_v57, %v2169_v51  ;;  %v1200_v59 = vmul.f32 0.1, %v1122_v44 }
 0x21d   :  { %v2172_v45 = vpop.f32.mrf.mxu1 }
 0x21e   :  { %v1125_v23 = vadd.f32 %v2171_v9, %v3205_v19  ;;  %v1232_v24 = vmax.f32 %v1122_v44, %v1200_v59 }
 0x21f   :  { %v2173_v1 = vpop.f32.mrf.mxu1 }
 0x220   :  { %v1201_v63 = vmul.f32 0.1, %v1125_v23  ;;  %v2174_v35 = vadd.f32 %v2173_v1, %v2172_v45 }
 0x221   :  { %v2175_v11 = vpop.f32.mrf.mxu1 }
 0x222   :  { %v1233_v28 = vmax.f32 %v1125_v23, %v1201_v63  ;;  %v1130_v46 = vadd.f32 %v2174_v35, %v3199_v50 }
 0x223   :  { %v2176_v3 = vpop.f32.mrf.mxu1 }
 0x224   :  { %v2177_v40 = vadd.f32 %v2176_v3, %v2175_v11  ;;  %v3237_v15 = vpack.c.bf16 %v1233_v28, %v1232_v24  ;;  %v1202_v56 = vmul.f32 0.1, %v1130_v46 }
 0x225   :  { %v3239_v32 = vpop.f32.mrf.mxu1 }
 0x226   :  { %v1133_v27 = vadd.f32 %v2177_v40, %v3201_v53  ;;  %v1234_v20 = vmax.f32 %v1130_v46, %v1202_v56 }
 0x227   :  { %v3242_v61 = vpop.f32.mrf.mxu1 }
 0x228   :  { %v1203_v19 = vmul.f32 0.1, %v1133_v27 }
 0x229   :  { %v2181_v47 = vpop.f32.mrf.mxu1 }
 0x22a   :  { %v1235_v18 = vmax.f32 %v1133_v27, %v1203_v19 }
 0x22b   :  { %v2182_v31 = vpop.f32.mrf.mxu1 }
 0x22c   :  { %v3244_v49 = vpack.c.bf16 %v1235_v18, %v1234_v20 }
 0x22d   :  { %v2184_v52 = vpop.f32.mrf.mxu1 }
 0x22f   :  { %v2185_v50 = vpop.f32.mrf.mxu1 }
 0x231   :  { %v2187_v17 = vpop.f32.mrf.mxu1 }
 0x233   :  { %v2188_v2 = vpop.f32.mrf.mxu1 }
 0x235   :  { %v2190_v8 = vpop.f32.mrf.mxu1 }
 0x237   :  { %v2191_v25 = vpop.f32.mrf.mxu1 }
 0x238   :  { %v2192_v27 = vadd.f32 %v2191_v25, %v2190_v8 }
 0x239   :  { %v2193_v22 = vpop.f32.mrf.mxu1 }
 0x23b   :  { %v2194_v55 = vpop.f32.mrf.mxu1 }
 0x23c   :  { %v2195_v28 = vadd.f32 %v2194_v55, %v2193_v22  ;;  %v1154_v22 = vadd.f32 %v2192_v27, %v3183_v5  ;;  %v2497_v27 = vld [vmem:[%s3498_s5 + $0xc0] ss:$8 sps:$4 sm:$0xff]  }
 0x23d   :  { %v2196_v10 = vpop.f32.mrf.mxu1 }
 0x23f   :  { %v2197_v48 = vpop.f32.mrf.mxu1 }
 0x240   :  { %v2198_v35 = vadd.f32 %v2197_v48, %v2196_v10 }
 0x241   :  { %v2199_v53 = vpop.f32.mrf.mxu1 }
 0x242   :  { %v1162_v19 = vadd.f32 %v2198_v35, %v3175_v43  ;;  %v2485_v35 = vld [vmem:[%s3498_s5 + $0x80] ss:$8 sps:$4 sm:$0xff]  }
 0x243   :  { %v2200_v30 = vpop.f32.mrf.mxu1 }
 0x244   :  { %v2201_v59 = vadd.f32 %v2200_v30, %v2199_v53  ;;  %v2186_v30 = vadd.f32 %v2185_v50, %v2184_v52  ;;  %v1208_v52 = vmul.f32 0.1, %v1154_v22 }
 0x245   :  { %v2202_v14 = vpop.f32.mrf.mxu1 }
 0x246   :  { %v1165_v46 = vadd.f32 %v2201_v59, %v3177_v60  ;;  %v1210_v60 = vmul.f32 0.1, %v1162_v19  ;;  %v2479_v59 = vld [vmem:[%s3498_s5 + $0x60] ss:$8 sps:$4 sm:$0xff]  }
 0x247   :  { %v2203_v12 = vpop.f32.mrf.mxu1 }
 0x248   :  { %v2204_v57 = vadd.f32 %v2203_v12, %v2202_v14  ;;  %v1211_v53 = vmul.f32 0.1, %v1165_v46  ;;  %v2183_v12 = vadd.f32 %v2182_v31, %v2181_v47  ;;  %v1242_v50 = vmax.f32 %v1162_v19, %v1210_v60  ;;  %v2498_v19 = vld [vmem:[%s3498_s5 + $0xd4] ss:$8 sps:$4 sm:$0xff]  }
 0x249   :  { %v2205_v54 = vpop.f32.mrf.mxu1 }
 0x24a   :  { %v1170_v11 = vadd.f32 %v2204_v57, %v3167_v42  ;;  %v1243_v43 = vmax.f32 %v1165_v46, %v1211_v53  ;;  %v1141_v5 = vadd.f32 %v2183_v12, %v3197_v37  ;;  %v2474_v57 = vld [vmem:[%s3498_s5 + $0x54] ss:$8 sps:$4 sm:$0xff]   ;;  %v2491_v46 = vld [vmem:[%s3498_s5 + $0xa0] ss:$8 sps:$4 sm:$0xff]  }
 0x24b   :  { %v2206_v51 = vpop.f32.mrf.mxu1  ;;  %v2504_v53 = vld [vmem:[%s3498_s5 + $0xf4] ss:$8 sps:$4 sm:$0xff]  }
 0x24c   :  { %v2207_v34 = vadd.f32 %v2206_v51, %v2205_v54  ;;  %v1212_v20 = vmul.f32 0.1, %v1170_v11  ;;  %v1293_v31 = vpack.c.bf16 %v1243_v43, %v1242_v50  ;;  %v1240_v51 = vmax.f32 %v1154_v22, %v1208_v52 }
 0x24d   :  { %v2208_v62 = vpop.f32.mrf.mxu1 }
 0x24e   :  { %v1173_v23 = vadd.f32 %v2207_v34, %v3169_v13  ;;  %v2189_v13 = vadd.f32 %v2188_v2, %v2187_v17  ;;  %v1244_v55 = vmax.f32 %v1170_v11, %v1212_v20  ;;  %v1146_v17 = vadd.f32 %v2186_v30, %v3191_v7  ;;  %v2486_v11 = vld [vmem:[%s3498_s5 + $0x94] ss:$8 sps:$4 sm:$0xff]   ;;  %v2500_v20 = vld [vmem:[%s3498_s5 + $0xd0] ss:$8 sps:$4 sm:$0xff]  }
 0x24f   :  { %v2209_v44 = vpop.f32.mrf.mxu1  ;;  %v2506_v30 = vld [vmem:[%s3498_s5 + $0xf0] ss:$8 sps:$4 sm:$0xff]  }
 0x250   :  { %v2210_v9 = vadd.f32 %v2209_v44, %v2208_v62  ;;  %v1213_v3 = vmul.f32 0.1, %v1173_v23  ;;  %v1206_v54 = vmul.f32 0.1, %v1146_v17 }
 0x251   :  { %v2211_v45 = vpop.f32.mrf.mxu1 }
 0x252   :  { %v1178_v1 = vadd.f32 %v2210_v9, %v3150_v21  ;;  %v1157_v21 = vadd.f32 %v2195_v28, %v3185_v29  ;;  %v1245_v10 = vmax.f32 %v1173_v23, %v1213_v3  ;;  %v2180_v29 = vadd.f32 %v3242_v61, %v3239_v32  ;;  %v2476_v9 = vld [vmem:[%s3498_s5 + $0x50] ss:$8 sps:$4 sm:$0xff]   ;;  %v2480_v23 = vld [vmem:[%s3498_s5 + $0x74] ss:$8 sps:$4 sm:$0xff]   ;;  %v2489_v28 = vld [vmem:[%s3498_s5 + $0xa4] ss:$8 sps:$4 sm:$0xff]  }
 0x253   :  { %v2212_v63 = vpop.f32.mrf.mxu1  ;;  %v1238_v61 = vmax.f32 %v1146_v17, %v1206_v54  ;;  %v2492_v3 = vld [vmem:[%s3498_s5 + $0xb4] ss:$8 sps:$4 sm:$0xff]  }
 0x254   :  { %v2213_v24 = vadd.f32 %v2212_v63, %v2211_v45  ;;  %v1214_v40 = vmul.f32 0.1, %v1178_v1  ;;  %v1209_v8 = vmul.f32 0.1, %v1157_v21  ;;  %v1294_v25 = vpack.c.bf16 %v1245_v10, %v1244_v55  ;;  %v2477_v45 = vld [vmem:[%s3498_s5 + $0x64] ss:$8 sps:$4 sm:$0xff]   ;;  %v3362_v10 = vpop.permute.xlu1 %1485 }
 0x255   :  { %v2483_v63 = vld [vmem:[%s3498_s5 + $0x84] ss:$8 sps:$4 sm:$0xff]  }
 0x256   :  { %v1181_v56 = vadd.f32 %v2213_v24, %v3158_v6  ;;  %v1246_v48 = vmax.f32 %v1178_v1, %v1214_v40  ;;  %v1149_v6 = vadd.f32 %v2189_v13, %v3193_v33  ;;  %v1241_v47 = vmax.f32 %v1157_v21, %v1209_v8  ;;  %v2482_v1 = vld [vmem:[%s3498_s5 + $0x70] ss:$8 sps:$4 sm:$0xff]   ;;  %v3354_v13 = vpop.permute.xlu0 %1480  ;;  %v2503_v21 = vld [vmem:[%s3498_s5 + $0xe0] ss:$8 sps:$4 sm:$0xff]  }
 0x257   :  { %v1138_v33 = vadd.f32 %v2180_v29, %v3195_v16  ;;  %v2459_v16 = vld [vmem:[%s3498_s5] ss:$8 sps:$4 sm:$0xff]   ;;  %v2488_v24 = vld [vmem:[%s3498_s5 + $0x90] ss:$8 sps:$4 sm:$0xff]  }
 0x258   :  { %v1215_v18 = vmul.f32 0.1, %v1181_v56  ;;  %v1207_v2 = vmul.f32 0.1, %v1149_v6  ;;  %v1292_v32 = vpack.c.bf16 %v1241_v47, %v1240_v51  ;;  %v2494_v40 = vld [vmem:[%s3498_s5 + $0xb0] ss:$8 sps:$4 sm:$0xff]  }
 0x259   :  { %v1204_v7 = vmul.f32 0.1, %v1138_v33 }
 0x25a   :  { %v1247_v42 = vmax.f32 %v1181_v56, %v1215_v18  ;;  %v1239_v62 = vmax.f32 %v1149_v6, %v1207_v2  ;;  %v2495_v56 = vld [vmem:[%s3498_s5 + $0xc4] ss:$8 sps:$4 sm:$0xff]  }
 0x25b   :  { %v1236_v44 = vmax.f32 %v1138_v33, %v1204_v7  ;;  %v2501_v18 = vld [vmem:[%s3498_s5 + $0xe4] ss:$8 sps:$4 sm:$0xff]  }
 0x25c   :  { %v1295_v14 = vpack.c.bf16 %v1247_v42, %v1246_v48  ;;  %v1291_v37 = vpack.c.bf16 %v1239_v62, %v1238_v61  ;;  %v3364_v48 = vpop.permute.xlu0 %1400  ;;  %v3366_v42 = vpop.permute.xlu1 %1405 }
 0x25e   :  { %2214 = vmatprep.subr.bf16.mxu0 %v1295_v14 }
 0x25f   :  { %2215 = vmatpush3.bf16.msra.mxu0 %v3233_v58  ;;  %v1205_v58 = vmul.f32 0.1, %v1141_v5 }
 0x260   :  { %2216 = vmatprep.subr.bf16.mxu0 %v1294_v25  ;;  %v3371_v22 = vpop.permute.xlu0 %1470  ;;  %v3373_v60 = vpop.permute.xlu1 %1475 }
 0x261   :  { %v1237_v34 = vmax.f32 %v1141_v5, %v1205_v58 }
 0x263   :  { %2217 = vmatpush3.bf16.msra.mxu0 %v3229_v4  ;;  %v1290_v4 = vpack.c.bf16 %v1237_v34, %v1236_v44 }
 0x264   :  { %2218 = vmatprep.subr.bf16.mxu0 %v1293_v31  ;;  %v3375_v55 = vpop.permute.xlu0 %1390  ;;  %v3377_v14 = vpop.permute.xlu1 %1395 }
 0x267   :  { %2219 = vmatpush3.bf16.msra.mxu0 %v3225_v41  ;;  %v2470_v41 = vld [vmem:[%s3498_s5 + $0x30] ss:$8 sps:$4 sm:$0xff]  }
 0x268   :  { %2220 = vmatprep.subr.bf16.mxu0 %v1292_v32  ;;  %v3379_v12 = vpop.permute.xlu0 %1460  ;;  %v3381_v6 = vpop.permute.xlu1 %1465 }
 0x26b   :  { %2221 = vmatpush3.bf16.msra.mxu0 %v3221_v0  ;;  %v2462_v0 = vld [vmem:[%s3498_s5 + $0x14] ss:$8 sps:$4 sm:$0xff]  }
 0x26c   :  { %2222 = vmatprep.subr.bf16.mxu0 %v1291_v37  ;;  %v3383_v8 = vpop.permute.xlu0 %1380  ;;  %v3385_v43 = vpop.permute.xlu1 %1385 }
 0x26f   :  { %2223 = vmatpush3.bf16.msra.mxu0 %v3217_v26  ;;  %v2468_v26 = vld [vmem:[%s3498_s5 + $0x34] ss:$8 sps:$4 sm:$0xff]  }
 0x270   :  { %2224 = vmatprep.subr.bf16.mxu0 %v1290_v4  ;;  %v3387_v25 = vpop.permute.xlu0 %1450  ;;  %v3389_v29 = vpop.permute.xlu1 %1455 }
 0x273   :  { %2225 = vmatpush3.bf16.msra.mxu0 %v3211_v36  ;;  %v2464_v36 = vld [vmem:[%s3498_s5 + $0x10] ss:$8 sps:$4 sm:$0xff]  }
 0x274   :  { %2226 = vmatprep.subr.bf16.mxu0 %v3244_v49  ;;  %v2473_v49 = vld [vmem:[%s3498_s5 + $0x40] ss:$8 sps:$4 sm:$0xff]   ;;  %v3391_v17 = vpop.permute.xlu0 %1370  ;;  %v3393_v52 = vpop.permute.xlu1 %1375 }
 0x277   :  { %2227 = vmatpush3.bf16.msra.mxu0 %v3209_v38  ;;  %v2465_v38 = vld [vmem:[%s3498_s5 + $0x24] ss:$8 sps:$4 sm:$0xff]  }
 0x278   :  { %2228 = vmatprep.subr.bf16.mxu0 %v3237_v15  ;;  %v2471_v15 = vld [vmem:[%s3498_s5 + $0x44] ss:$8 sps:$4 sm:$0xff]   ;;  %v3395_v50 = vpop.permute.xlu0 %1440  ;;  %v3397_v5 = vpop.permute.xlu1 %1445 }
 0x27b   :  { %2229 = vmatpush3.bf16.msra.mxu0 %v3207_v39  ;;  %v2467_v39 = vld [vmem:[%s3498_s5 + $0x20] ss:$8 sps:$4 sm:$0xff]  }
 0x27c   :  { %v1361_v2 = vpop.permute.xlu0 %1360  ;;  %v1366_v47 = vpop.permute.xlu1 %1365 }
 0x27e   :  { %1681 = vmatmul.mubr.bf16.vlgmr.msra.gmra.mxu0 %v2459_v16 }
 0x27f   :  { %1688 = vmatprep.mubr.bf16.mxu0 %v2462_v0 }
 0x280   :  { %v3399_v31 = vpop.permute.xlu0 %1430  ;;  %v3401_v33 = vpop.permute.xlu1 %1435 }
 0x284   :  { %v1351_v54 = vpop.permute.xlu0 %1350  ;;  %v1356_v51 = vpop.permute.xlu1 %1355 }
 0x286   :  { %1689 = vmatmul.mubr.bf16.gmra.mxu0 %v2464_v36 }
 0x287   :  { %1696 = vmatprep.mubr.bf16.mxu0 %v2465_v38 }
 0x288   :  { %v3403_v58 = vpop.permute.xlu0 %1420  ;;  %v3405_v62 = vpop.permute.xlu1 %1425 }
 0x28c   :  { %v1341_v32 = vpop.permute.xlu0 %1340  ;;  %v1346_v7 = vpop.permute.xlu1 %1345 }
 0x28e   :  { %1697 = vmatmul.mubr.bf16.gmra.mxu0 %v2467_v39 }
 0x28f   :  { %1704 = vmatprep.mubr.bf16.mxu0 %v2468_v26 }
 0x290   :  { %v3407_v61 = vpop.permute.xlu0 %1410  ;;  %v3409_v37 = vpop.permute.xlu1 %1415 }
 0x294   :  { %v1331_v16 = vpop.permute.xlu0 %1330  ;;  %v1336_v26 = vpop.permute.xlu1 %1335 }
 0x296   :  { %1705 = vmatmul.mubr.bf16.gmra.mxu0 %v2470_v41 }
 0x297   :  { %1712 = vmatprep.mubr.bf16.mxu0 %v2471_v15 }
 0x29e   :  { %1713 = vmatmul.mubr.bf16.gmra.mxu0 %v2473_v49 }
 0x29f   :  { %1720 = vmatprep.mubr.bf16.mxu0 %v2474_v57 }
 0x2a6   :  { %1721 = vmatmul.mubr.bf16.gmra.mxu0 %v2476_v9 }
 0x2a7   :  { %1728 = vmatprep.mubr.bf16.mxu0 %v2477_v45 }
 0x2ae   :  { %1729 = vmatmul.mubr.bf16.gmra.mxu0 %v2479_v59 }
 0x2af   :  { %1736 = vmatprep.mubr.bf16.mxu0 %v2480_v23 }
 0x2b6   :  { %1737 = vmatmul.mubr.bf16.gmra.mxu0 %v2482_v1 }
 0x2b7   :  { %1744 = vmatprep.mubr.bf16.mxu0 %v2483_v63 }
 0x2be   :  { %1745 = vmatmul.mubr.bf16.gmra.mxu0 %v2485_v35 }
 0x2bf   :  { %1752 = vmatprep.mubr.bf16.mxu0 %v2486_v11 }
 0x2c6   :  { %1753 = vmatmul.mubr.bf16.gmra.mxu0 %v2488_v24 }
 0x2c7   :  { %1760 = vmatprep.mubr.bf16.mxu0 %v2489_v28 }
 0x2ce   :  { %1761 = vmatmul.mubr.bf16.gmra.mxu0 %v2491_v46 }
 0x2cf   :  { %1768 = vmatprep.mubr.bf16.mxu0 %v2492_v3 }
 0x2d6   :  { %1769 = vmatmul.mubr.bf16.gmra.mxu0 %v2494_v40 }
 0x2d7   :  { %1776 = vmatprep.mubr.bf16.mxu0 %v2495_v56 }
 0x2de   :  { %1777 = vmatmul.mubr.bf16.gmra.mxu0 %v2497_v27 }
 0x2df   :  { %1784 = vmatprep.mubr.bf16.mxu0 %v2498_v19 }
 0x2e6   :  { %1785 = vmatmul.mubr.bf16.gmra.mxu0 %v2500_v20 }
 0x2e7   :  { %1792 = vmatprep.mubr.bf16.mxu0 %v2501_v18 }
 0x2ee   :  { %1793 = vmatmul.mubr.bf16.gmra.mxu0 %v2503_v21 }
 0x2ef   :  { %1800 = vmatprep.mubr.bf16.mxu0 %v2504_v53 }
 0x2f6   :  { %1801 = vmatmul.mubr.bf16.gmra.mxu0 %v2506_v30 }
 0x33e   :  { %v2230_v34 = vpop.f32.mrf.mxu0 }
 0x340   :  { %v2231_v44 = vpop.f32.mrf.mxu0 }
 0x341   :  { %v2232_v4 = vadd.f32 %v2231_v44, %v2230_v34 }
 0x342   :  { %v2233_v0 = vpop.f32.mrf.mxu0 }
 0x343   :  { %v1683_v36 = vadd.f32 %v2232_v4, %v1331_v16 }
 0x344   :  { %v2234_v38 = vpop.f32.mrf.mxu0 }
 0x345   :  { %v2235_v39 = vadd.f32 %v2234_v38, %v2233_v0  ;;  %v1809_v15 = vmul.f32 0.1, %v1683_v36 }
 0x346   :  { %v2236_v41 = vpop.f32.mrf.mxu0 }
 0x347   :  { %v1686_v49 = vadd.f32 %v2235_v39, %v1336_v26  ;;  %v1841_v23 = vmax.f32 %v1683_v36, %v1809_v15  ;;  %v1896_v15 = vlaneseq }
 0x348   :  { %v2237_v57 = vpop.f32.mrf.mxu0 }
 0x349   :  { %v1810_v9 = vmul.f32 0.1, %v1686_v49  ;;  %v2238_v45 = vadd.f32 %v2237_v57, %v2236_v41 }
 0x34a   :  { %v2239_v59 = vpop.f32.mrf.mxu0 }
 0x34b   :  { %v1842_v1 = vmax.f32 %v1686_v49, %v1810_v9  ;;  %v1691_v63 = vadd.f32 %v2238_v45, %v1341_v32 }
 0x34c   :  { %v2240_v35 = vpop.f32.mrf.mxu0 }
 0x34d   :  { %v3411_v11 = vpack.c.bf16 %v1842_v1, %v1841_v23  ;;  %v2241_v24 = vadd.f32 %v2240_v35, %v2239_v59  ;;  %v1811_v46 = vmul.f32 0.1, %v1691_v63  ;;  %v2534_v59 = vmov 1966171168  }
 0x34e   :  { %v2242_v28 = vpop.f32.mrf.mxu0  ;;  %v1910_v23 = vunpack.c.l.s4 %v2534_v59 }
 0x34f   :  { %v1694_v3 = vadd.f32 %v2241_v24, %v1346_v7  ;;  %v1843_v20 = vmax.f32 %v1691_v63, %v1811_v46  ;;  %v3417_v63 = vshrl.u32 %v1896_v15, 7 }
 0x350   :  { %v2243_v40 = vpop.f32.mrf.mxu0  ;;  %v1911_v24 = vunpack.c.0.s8 %v1910_v23 }
 0x351   :  { %v1812_v56 = vmul.f32 0.1, %v1694_v3  ;;  %v2244_v27 = vadd.f32 %v2243_v40, %v2242_v28 }
 0x352   :  { %v2245_v19 = vpop.f32.mrf.mxu0 }
 0x353   :  { %v1844_v18 = vmax.f32 %v1694_v3, %v1812_v56  ;;  %v1699_v21 = vadd.f32 %v2244_v27, %v1351_v54  ;;  %v3428_v56 = vsub.s32 %v1911_v24, %v3417_v63 }
 0x354   :  { %v2246_v53 = vpop.f32.mrf.mxu0 }
 0x355   :  { %v3413_v30 = vpack.c.bf16 %v1844_v18, %v1843_v20  ;;  %v2247_v34 = vadd.f32 %v2246_v53, %v2245_v19  ;;  %v1813_v32 = vmul.f32 0.1, %v1699_v21 }
 0x356   :  { %v2248_v44 = vpop.f32.mrf.mxu0 }
 0x357   :  { %v1702_v4 = vadd.f32 %v2247_v34, %v1356_v51  ;;  %v1845_v39 = vmax.f32 %v1699_v21, %v1813_v32 }
 0x358   :  { %v2249_v16 = vpop.f32.mrf.mxu0 }
 0x359   :  { %v1814_v0 = vmul.f32 0.1, %v1702_v4  ;;  %v2250_v36 = vadd.f32 %v2249_v16, %v2248_v44 }
 0x35a   :  { %v2251_v38 = vpop.f32.mrf.mxu0 }
 0x35b   :  { %v1846_v7 = vmax.f32 %v1702_v4, %v1814_v0  ;;  %v1707_v26 = vadd.f32 %v2250_v36, %v1361_v2  ;;  %v3422_v2 = vld.sshfl [vmem:[%s3500_s7] sm:$0x11 pattern:$0x75316420]  ;;  %s2535_s7 = smov [#allocation3]  }
 0x35c   :  { %v2252_v41 = vpop.f32.mrf.mxu0  ;;  %v1915_v18 = vrot.slane %v3422_v2, %v3428_v56  ;;  %s1978_s12 = sshll.u32 %s2535_s7, 4  ;;  %s1979_s12 = int_to_ptr.vmem [resolvable:$true] %s1978_s12 }
 0x35d   :  { %v3415_v49 = vpack.c.bf16 %v1846_v7, %v1845_v39  ;;  %v2253_v57 = vadd.f32 %v2252_v41, %v2251_v38  ;;  %v1815_v54 = vmul.f32 0.1, %v1707_v26  ;;  %s2511_s13 = scalar_lea.vmem %s1979_s12, 16  ;;  %s2515_s14 = scalar_lea.vmem %s1979_s12, 32 }
 0x35e   :  { %v2254_v9 = vpop.f32.mrf.mxu0  ;;  %p2512_p0 = scmp.ne.s32.totalorder %s1979_s12, %s2511_s13  ;;  %p2516_p1 = scmp.lt.s32.totalorder %s1979_s12, %s1979_s12 }
 0x35f   :  { %v1710_v45 = vadd.f32 %v2253_v57, %v1366_v47  ;;  %v1847_v28 = vmax.f32 %v1707_v26, %v1815_v54  ;;  %v1908_v47 = vcombine.high %v3422_v2, %v3422_v2  ;;  %p2517_p2 = scmp.lt.s32.totalorder %s2515_s14, %s2511_s13 }
 0x360   :  { %v2255_v1 = vpop.f32.mrf.mxu0 }
 0x361   :  { %v1816_v51 = vmul.f32 0.1, %v1710_v45  ;;  %v2256_v35 = vadd.f32 %v2255_v1, %v2254_v9  ;;  %v1922_v53 = vrot.slane %v1908_v47, %v3428_v56  ;;  %p2518_p3 = por %p2517_p2, %p2516_p1 }
 0x362   :  { %v2257_v46 = vpop.f32.mrf.mxu0 }
 0x363   :  { %v1848_v3 = vmax.f32 %v1710_v45, %v1816_v51  ;;  %v1715_v40 = vadd.f32 %v2256_v35, %v3391_v17  ;;  %1957 = vmatprep.mubr.bf16.mxu1 %v1922_v53  ;;  %p2519_p4 = pnand %p2518_p3, %p2512_p0 }
 0x364   :  { %v2258_v27 = vpop.f32.mrf.mxu0 }
 0x365   :  { %v3430_v19 = vpack.c.bf16 %v1848_v3, %v1847_v28  ;;  %v2259_v20 = vadd.f32 %v2258_v27, %v2257_v46  ;;  %v1817_v34 = vmul.f32 0.1, %v1715_v40 }
 0x366   :  { %v2260_v21 = vpop.f32.mrf.mxu0 }
 0x367   :  { %v1718_v44 = vadd.f32 %v2259_v20, %v3393_v52  ;;  %v1849_v0 = vmax.f32 %v1715_v40, %v1817_v34 }
 0x368   :  { %v2261_v17 = vpop.f32.mrf.mxu0 }
 0x369   :  { %v1818_v32 = vmul.f32 0.1, %v1718_v44  ;;  %v2262_v4 = vadd.f32 %v2261_v17, %v2260_v21 }
 0x36a   :  { %v2263_v16 = vpop.f32.mrf.mxu0 }
 0x36b   :  { %v1850_v36 = vmax.f32 %v1718_v44, %v1818_v32  ;;  %v1723_v38 = vadd.f32 %v2262_v4, %v3383_v8 }
 0x36c   :  { %v2264_v39 = vpop.f32.mrf.mxu0 }
 0x36d   :  { %v3437_v7 = vpack.c.bf16 %v1850_v36, %v1849_v0  ;;  %v2265_v26 = vadd.f32 %v2264_v39, %v2263_v16  ;;  %v1819_v15 = vmul.f32 0.1, %v1723_v38 }
 0x36e   :  { %v2266_v41 = vpop.f32.mrf.mxu0 }
 0x36f   :  { %v1726_v57 = vadd.f32 %v2265_v26, %v3385_v43  ;;  %v1851_v59 = vmax.f32 %v1723_v38, %v1819_v15 }
 0x370   :  { %v2267_v54 = vpop.f32.mrf.mxu0 }
 0x371   :  { %v1820_v9 = vmul.f32 0.1, %v1726_v57  ;;  %v2268_v52 = vadd.f32 %v2267_v54, %v2266_v41 }
 0x372   :  { %v2269_v45 = vpop.f32.mrf.mxu0 }
 0x373   :  { %v1852_v23 = vmax.f32 %v1726_v57, %v1820_v9  ;;  %v1731_v1 = vadd.f32 %v2268_v52, %v3375_v55 }
 0x374   :  { %v2270_v51 = vpop.f32.mrf.mxu0 }
 0x375   :  { %v3441_v35 = vpack.c.bf16 %v1852_v23, %v1851_v59  ;;  %v2271_v8 = vadd.f32 %v2270_v51, %v2269_v45  ;;  %v1821_v28 = vmul.f32 0.1, %v1731_v1 }
 0x376   :  { %v2272_v24 = vpop.f32.mrf.mxu0 }
 0x377   :  { %v1734_v46 = vadd.f32 %v2271_v8, %v3377_v14  ;;  %v1853_v27 = vmax.f32 %v1731_v1, %v1821_v28 }
 0x378   :  { %v2273_v3 = vpop.f32.mrf.mxu0 }
 0x379   :  { %v1822_v40 = vmul.f32 0.1, %v1734_v46  ;;  %v2274_v47 = vadd.f32 %v2273_v3, %v2272_v24 }
 0x37a   :  { %v2275_v43 = vpop.f32.mrf.mxu0 }
 0x37b   :  { %v1854_v20 = vmax.f32 %v1734_v46, %v1822_v40  ;;  %v1739_v21 = vadd.f32 %v2274_v47, %v3364_v48 }
 0x37c   :  { %v2276_v53 = vpop.f32.mrf.mxu0 }
 0x37d   :  { %v3445_v34 = vpack.c.bf16 %v1854_v20, %v1853_v27  ;;  %v2277_v55 = vadd.f32 %v2276_v53, %v2275_v43  ;;  %v1823_v17 = vmul.f32 0.1, %v1739_v21 }
 0x37e   :  { %v2278_v44 = vpop.f32.mrf.mxu0 }
 0x37f   :  { %v1742_v32 = vadd.f32 %v2277_v55, %v3366_v42  ;;  %v1855_v36 = vmax.f32 %v1739_v21, %v1823_v17 }
 0x380   :  { %v2279_v4 = vpop.f32.mrf.mxu0 }
 0x381   :  { %v1824_v16 = vmul.f32 0.1, %v1742_v32  ;;  %v2280_v0 = vadd.f32 %v2279_v4, %v2278_v44 }
 0x382   :  { %v2281_v14 = vpop.f32.mrf.mxu0 }
 0x383   :  { %v1856_v38 = vmax.f32 %v1742_v32, %v1824_v16  ;;  %v1747_v39 = vadd.f32 %v2280_v0, %v3407_v61 }
 0x384   :  { %v2282_v26 = vpop.f32.mrf.mxu0 }
 0x385   :  { %v3449_v41 = vpack.c.bf16 %v1856_v38, %v1855_v36  ;;  %v2283_v48 = vadd.f32 %v2282_v26, %v2281_v14  ;;  %v1825_v57 = vmul.f32 0.1, %v1747_v39 }
 0x386   :  { %v2284_v15 = vpop.f32.mrf.mxu0 }
 0x387   :  { %v1750_v54 = vadd.f32 %v2283_v48, %v3409_v37  ;;  %v1857_v59 = vmax.f32 %v1747_v39, %v1825_v57 }
 0x388   :  { %v2285_v9 = vpop.f32.mrf.mxu0 }
 0x389   :  { %v1826_v52 = vmul.f32 0.1, %v1750_v54  ;;  %v2286_v45 = vadd.f32 %v2285_v9, %v2284_v15 }
 0x38a   :  { %v2287_v42 = vpop.f32.mrf.mxu0 }
 0x38b   :  { %v1858_v23 = vmax.f32 %v1750_v54, %v1826_v52  ;;  %v1755_v1 = vadd.f32 %v2286_v45, %v3403_v58 }
 0x38c   :  { %v2288_v51 = vpop.f32.mrf.mxu0 }
 0x38d   :  { %v2289_v8 = vadd.f32 %v2288_v51, %v2287_v42  ;;  %v3453_v24 = vpack.c.bf16 %v1858_v23, %v1857_v59  ;;  %v1827_v28 = vmul.f32 0.1, %v1755_v1 }
 0x38e   :  { %v3455_v61 = vpop.f32.mrf.mxu0 }
 0x38f   :  { %v1758_v46 = vadd.f32 %v2289_v8, %v3405_v62  ;;  %v1859_v47 = vmax.f32 %v1755_v1, %v1827_v28 }
 0x390   :  { %v3458_v3 = vpop.f32.mrf.mxu0 }
 0x391   :  { %v1828_v37 = vmul.f32 0.1, %v1758_v46 }
 0x392   :  { %v2293_v40 = vpop.f32.mrf.mxu0 }
 0x393   :  { %v1860_v43 = vmax.f32 %v1758_v46, %v1828_v37 }
 0x394   :  { %v2294_v27 = vpop.f32.mrf.mxu0 }
 0x395   :  { %v3460_v20 = vpack.c.bf16 %v1860_v43, %v1859_v47 }
 0x396   :  { %v2296_v21 = vpop.f32.mrf.mxu0 }
 0x398   :  { %v2297_v58 = vpop.f32.mrf.mxu0 }
 0x39a   :  { %v2299_v53 = vpop.f32.mrf.mxu0 }
 0x39c   :  { %v2300_v55 = vpop.f32.mrf.mxu0 }
 0x39e   :  { %v2302_v44 = vpop.f32.mrf.mxu0 }
 0x3a0   :  { %v2303_v17 = vpop.f32.mrf.mxu0 }
 0x3a2   :  { %v2305_v32 = vpop.f32.mrf.mxu0 }
 0x3a4   :  { %v2306_v4 = vpop.f32.mrf.mxu0 }
 0x3a5   :  { %v2307_v28 = vadd.f32 %v2306_v4, %v2305_v32 }
 0x3a6   :  { %v2308_v16 = vpop.f32.mrf.mxu0 }
 0x3a8   :  { %v2309_v0 = vpop.f32.mrf.mxu0 }
 0x3a9   :  { %v2310_v1 = vadd.f32 %v2309_v0, %v2308_v16 }
 0x3aa   :  { %v2311_v62 = vpop.f32.mrf.mxu0 }
 0x3ac   :  { %v2312_v14 = vpop.f32.mrf.mxu0 }
 0x3ad   :  { %v2313_v45 = vadd.f32 %v2312_v14, %v2311_v62 }
 0x3ae   :  { %v2314_v36 = vpop.f32.mrf.mxu0 }
 0x3af   :  { %v1790_v46 = vadd.f32 %v2313_v45, %v3381_v6 }
 0x3b0   :  { %v2315_v38 = vpop.f32.mrf.mxu0 }
 0x3b1   :  { %v2316_v54 = vadd.f32 %v2315_v38, %v2314_v36  ;;  %v2304_v36 = vadd.f32 %v2303_v17, %v2302_v44  ;;  %v1787_v38 = vadd.f32 %v2310_v1, %v3379_v12 }
 0x3b2   :  { %v2317_v39 = vpop.f32.mrf.mxu0 }
 0x3b3   :  { %v1795_v51 = vadd.f32 %v2316_v54, %v3371_v22  ;;  %v1779_v32 = vadd.f32 %v2304_v36, %v3387_v25  ;;  %v1835_v6 = vmul.f32 0.1, %v1787_v38 }
 0x3b4   :  { %v2318_v26 = vpop.f32.mrf.mxu0 }
 0x3b5   :  { %v2319_v15 = vadd.f32 %v2318_v26, %v2317_v39  ;;  %v1837_v62 = vmul.f32 0.1, %v1795_v51  ;;  %v1836_v39 = vmul.f32 0.1, %v1790_v46  ;;  %v2298_v26 = vadd.f32 %v2297_v58, %v2296_v21 }
 0x3b6   :  { %v2320_v48 = vpop.f32.mrf.mxu0  ;;  %v1833_v21 = vmul.f32 0.1, %v1779_v32  ;;  %v1867_v58 = vmax.f32 %v1787_v38, %v1835_v6 }
 0x3b7   :  { %v1798_v42 = vadd.f32 %v2319_v15, %v3373_v60  ;;  %v2301_v60 = vadd.f32 %v2300_v55, %v2299_v53  ;;  %v1869_v4 = vmax.f32 %v1795_v51, %v1837_v62  ;;  %v2295_v15 = vadd.f32 %v2294_v27, %v2293_v40 }
 0x3b8   :  { %v2321_v57 = vpop.f32.mrf.mxu0  ;;  %v1868_v12 = vmax.f32 %v1790_v46, %v1836_v39  ;;  %v1771_v53 = vadd.f32 %v2298_v26, %v3395_v50  ;;  %v1865_v54 = vmax.f32 %v1779_v32, %v1833_v21 }
 0x3b9   :  { %v2322_v9 = vadd.f32 %v2321_v57, %v2320_v48  ;;  %v1838_v37 = vmul.f32 0.1, %v1798_v42  ;;  %v1766_v25 = vadd.f32 %v2295_v15, %v3401_v33 }
 0x3ba   :  { %v2323_v52 = vpop.f32.mrf.mxu0  ;;  %v1887_v27 = vpack.c.bf16 %v1868_v12, %v1867_v58  ;;  %v1831_v57 = vmul.f32 0.1, %v1771_v53 }
 0x3bb   :  { %v1803_v59 = vadd.f32 %v2322_v9, %v3354_v13  ;;  %v1782_v13 = vadd.f32 %v2307_v28, %v3389_v29  ;;  %v1870_v16 = vmax.f32 %v1798_v42, %v1838_v37  ;;  %v2292_v29 = vadd.f32 %v3458_v3, %v3455_v61 }
 0x3bc   :  { %v2324_v23 = vpop.f32.mrf.mxu0  ;;  %v1863_v3 = vmax.f32 %v1771_v53, %v1831_v57 }
 0x3bd   :  { %v2325_v8 = vadd.f32 %v2324_v23, %v2323_v52  ;;  %v1839_v47 = vmul.f32 0.1, %v1803_v59  ;;  %v1834_v44 = vmul.f32 0.1, %v1782_v13  ;;  %v1888_v17 = vpack.c.bf16 %v1870_v16, %v1869_v4 }
 0x3bf   :  { %v1806_v43 = vadd.f32 %v2325_v8, %v3362_v10  ;;  %v1871_v0 = vmax.f32 %v1803_v59, %v1839_v47  ;;  %v1774_v10 = vadd.f32 %v2301_v60, %v3397_v5  ;;  %v1866_v40 = vmax.f32 %v1782_v13, %v1834_v44 }
 0x3c0   :  { %v1763_v5 = vadd.f32 %v2292_v29, %v3399_v31  ;;  %v1898_v31 = vsub.s32 0, %v3417_v63 }
 0x3c1   :  { %v1840_v14 = vmul.f32 0.1, %v1806_v43  ;;  %v1832_v55 = vmul.f32 0.1, %v1774_v10  ;;  %v1886_v61 = vpack.c.bf16 %v1866_v40, %v1865_v54 }
 0x3c2   :  { %v1829_v50 = vmul.f32 0.1, %v1763_v5 }
 0x3c3   :  { %v1872_v22 = vmax.f32 %v1806_v43, %v1840_v14  ;;  %v1864_v9 = vmax.f32 %v1774_v10, %v1832_v55 }
 0x3c4   :  { %v1861_v45 = vmax.f32 %v1763_v5, %v1829_v50 }
 0x3c5   :  { %v1889_v48 = vpack.c.bf16 %v1872_v22, %v1871_v0  ;;  %v1885_v33 = vpack.c.bf16 %v1864_v9, %v1863_v3 }
 0x3c7   :  { %2326 = vmatprep.subr.bf16.mxu1 %v1889_v48 }
 0x3c8   :  { %2327 = vmatpush3.bf16.msra.mxu1 %v3449_v41  ;;  %v1830_v41 = vmul.f32 0.1, %v1766_v25 }
 0x3c9   :  { %2328 = vmatprep.subr.bf16.mxu1 %v1888_v17 }
 0x3ca   :  { %v1862_v52 = vmax.f32 %v1766_v25, %v1830_v41 }
 0x3cc   :  { %2329 = vmatpush3.bf16.msra.mxu1 %v3445_v34  ;;  %v1884_v34 = vpack.c.bf16 %v1862_v52, %v1861_v45 }
 0x3cd   :  { %2330 = vmatprep.subr.bf16.mxu1 %v1887_v27 }
 0x3d0   :  { %2331 = vmatpush3.bf16.msra.mxu1 %v3441_v35 }
 0x3d1   :  { %2332 = vmatprep.subr.bf16.mxu1 %v1886_v61 }
 0x3d4   :  { %2333 = vmatpush3.bf16.msra.mxu1 %v3437_v7  ;;  %v1894_v7 = vpop.permute.xlu0 %1893 }
 0x3d5   :  { %2334 = vmatprep.subr.bf16.mxu1 %v1885_v33  ;;  %v1899_v42 = vrot.slane %v1894_v7, %v1898_v31 }
 0x3d8   :  { %2335 = vmatpush3.bf16.msra.mxu1 %v3430_v19 }
 0x3d9   :  { %2336 = vmatprep.subr.bf16.mxu1 %v1884_v34 }
 0x3dc   :  { %2337 = vmatpush3.bf16.msra.mxu1 %v3415_v49 }
 0x3dd   :  { %2338 = vmatprep.subr.bf16.mxu1 %v3460_v20 }
 0x3e0   :  { %2339 = vmatpush3.bf16.msra.mxu1 %v3413_v30 }
 0x3e1   :  { %2340 = vmatprep.subr.bf16.mxu1 %v3453_v24 }
 0x3e4   :  { %2341 = vmatpush3.bf16.msra.mxu1 %v3411_v11 }
 0x3e7   :  { %1958 = vmatmul.mubr.bf16.vlgmr.msra.gmra.mxu1 %v1915_v18 }
 0x4a7   :  { %v2342_v35 = vpop.f32.mrf.mxu1 }
 0x4a9   :  { %v2343_v19 = vpop.f32.mrf.mxu1 }
 0x4aa   :  { %v2344_v59 = vadd.f32 %v2343_v19, %v2342_v35 }
 0x4ab   :  { %v2345_v49 = vpop.f32.mrf.mxu1 }
 0x4ac   :  { %v1960_v23 = vadd.f32 %v2344_v59, %v1899_v42 }
 0x4ad   :  { %v2346_v20 = vpop.f32.mrf.mxu1 }
 0x4ae   :  { %v2083_v1 = vmul.f32 -1.442695, %v1960_v23 }
 0x4b0   :  { %2507 = vpow2.f32 %v2083_v1 }
 0x4bd   :  { %v2508_v30 = vpop.eup %2507 }
 0x4be   :  { %v1968_v24 = vadd.f32 1.0, %v2508_v30 }
 0x4c0   :  { %2509 = vrcp.f32 %v1968_v24 }
 0x4cd   :  { %v2510_v11 = vpop.eup %2509 }
 0x4ce   :  { %1971 = vst [vmem:[#allocation3] sm:$0x1] %v2510_v11 }
 0x4cf   :  { %2522 = shalt.err (!%p2519_p4)
}
 0x4d0   :  { %1981 = dma.vmem_to_hbm [thread:$0]  %s1979_s12, 16, %s3502_s9, [#allocation4]  }
 0x4d1   :  { %2531 = dma.done.wait [#allocation4], 16  }
 0x4d2   :  { %2532 = vsyncadd [#allocation4], 4294967280 }
 0x4d3   :  { %1985 = vsyncpa [#allocation4], 1 }

</bundles_post_ra>
